<compile_context>
chip_gen: v5e
topology: v5e:2x2
jax: 0.10.0
libtpu: 0.0.40
codegen_flags: <defaults>
</compile_context>

<pallas_src>
import math

import jax
import jax.numpy as jnp
from jax.experimental import pallas as pl
from jax.experimental.pallas import tpu as pltpu

D_IN, D_H1, D_H2, D_OUT = 10, 16, 256, 784
D_IN_PAD = 128          # pad input features to one full lane group
D_H1_PAD = 128          # pad first hidden layer to one full lane group
D_OUT_PAD = 896         # 7 * 128: lane-dense output (unmasked stores)


def _round_up(a, m):
    return (a + m - 1) // m * m


def generator_kernel(x_ref, w1_ref, b1_ref, w2_ref, b2_ref, w3_ref, b3_ref, o_ref):
    # Layer 1: (bm, 128)bf16 @ (128, 128)bf16 -> f32; bias + sigmoid in f32.
    h1 = jnp.dot(x_ref[...], w1_ref[...], preferred_element_type=jnp.float32)
    h1 = jax.nn.sigmoid(h1 + b1_ref[...])
    # Layer 2: (bm, 128)bf16 @ (128, 256)bf16 -> f32.  Padded h1 columns are
    # 0.5 but the matching w2 rows are zero, so the result is exact.
    h2 = jnp.dot(h1.astype(jnp.bfloat16), w2_ref[...],
                 preferred_element_type=jnp.float32)
    h2 = jax.nn.sigmoid(h2 + b2_ref[...])
    # Layer 3: (bm, 256)bf16 @ (256, 896)bf16 -> f32.
    h3 = jnp.dot(h2.astype(jnp.bfloat16), w3_ref[...],
                 preferred_element_type=jnp.float32)
    o_ref[...] = jax.nn.sigmoid(h3 + b3_ref[...]).astype(o_ref.dtype)


def generator_forward(x, params, *, bm=512, out_dtype=jnp.float32):
    """x: [B, 10] float32.  params: dict of f32 weights/biases.  Returns [B, 784]."""
    B = x.shape[0]

    # Effective batch tile: clamp for small batches, keep a multiple of 16 so
    # bf16 (16,128) sublane packing is clean; pad batch to a tile multiple.
    bm_eff = min(bm, _round_up(B, 16))
    B_pad = _round_up(B, bm_eff)

    # Pad input to (B_pad, 128) and cast to bf16 (halves the input DMA bytes).
    x_p = jnp.pad(x, ((0, B_pad - B), (0, D_IN_PAD - D_IN))).astype(jnp.bfloat16)

    # Weights in (in, out) layout, bf16 for the MXU; biases stay f32.
    # Zero-pad: extra w1 rows (input pad) and w2 rows (h1 pad) are zero, so the
    # padded lanes never affect the real outputs.
    w1 = jnp.pad(params["w1"],
                 ((0, D_IN_PAD - D_IN), (0, D_H1_PAD - D_H1))).astype(jnp.bfloat16)
    b1 = jnp.pad(params["b1"], ((0, 0), (0, D_H1_PAD - D_H1))).astype(jnp.float32)
    w2 = jnp.pad(params["w2"], ((0, D_H1_PAD - D_H1), (0, 0))).astype(jnp.bfloat16)
    b2 = params["b2"].astype(jnp.float32)
    w3 = jnp.pad(params["w3"], ((0, 0), (0, D_OUT_PAD - D_OUT))).astype(jnp.bfloat16)
    b3 = jnp.pad(params["b3"], ((0, 0), (0, D_OUT_PAD - D_OUT))).astype(jnp.float32)

    # Weights/biases live fully in VMEM (constant block index); tile only batch.
    full = lambda shape: pl.BlockSpec(shape, lambda i: (0, 0))

    out_padded = pl.pallas_call(
        generator_kernel,
        out_shape=jax.ShapeDtypeStruct((B_pad, D_OUT_PAD), out_dtype),
        grid_spec=pltpu.PrefetchScalarGridSpec(
            num_scalar_prefetch=0,
            grid=(B_pad // bm_eff,),
            in_specs=[
                pl.BlockSpec((bm_eff, D_IN_PAD), lambda i: (i, 0)),
                full(w1.shape), full(b1.shape),
                full(w2.shape), full(b2.shape),
                full(w3.shape), full(b3.shape),
            ],
            out_specs=pl.BlockSpec((bm_eff, D_OUT_PAD), lambda i: (i, 0)),
        ),
        compiler_params=pltpu.CompilerParams(
            dimension_semantics=("parallel",),
        ),
    )(x_p, w1, b1, w2, b2, w3, b3)

    return out_padded[:B, :D_OUT]


def init_params(key):
    """Deterministic init mirroring nn.Linear's U(-1/sqrt(fan_in), 1/sqrt(fan_in))."""
    keys = jax.random.split(key, 6)

    def linear(kw, kb, fan_in, fan_out):
        bound = 1.0 / math.sqrt(fan_in)
        w = jax.random.uniform(kw, (fan_in, fan_out), jnp.float32, -bound, bound)
        b = jax.random.uniform(kb, (1, fan_out), jnp.float32, -bound, bound)
        return w, b

    w1, b1 = linear(keys[0], keys[1], D_IN, D_H1)
    w2, b2 = linear(keys[2], keys[3], D_H1, D_H2)
    w3, b3 = linear(keys[4], keys[5], D_H2, D_OUT)
    return {"w1": w1, "b1": b1, "w2": w2, "b2": b2, "w3": w3, "b3": b3}


def reference_forward(x, params):
    h = jax.nn.sigmoid(x @ params["w1"] + params["b1"])
    h = jax.nn.sigmoid(h @ params["w2"] + params["b2"])
    return jax.nn.sigmoid(h @ params["w3"] + params["b3"])


if __name__ == "__main__":
    key = jax.random.PRNGKey(0)
    k_params, k_x = jax.random.split(key)

    params = init_params(k_params)

    B = 8  # small demo batch; one-hot-ish class vectors of length 10
    x = jax.nn.one_hot(jnp.arange(B) % 10, D_IN, dtype=jnp.float32)
    x = x + 0.01 * jax.random.normal(k_x, (B, D_IN), jnp.float32)

    out = jax.block_until_ready(generator_forward(x, params))

    ref = reference_forward(x, params)
    assert out.shape == (B, D_OUT)
    # bf16 matmul inputs with f32 accumulation -> small, sigmoid-bounded error.
    max_err = float(jnp.max(jnp.abs(out - ref)))
    assert jnp.allclose(out, ref, atol=2e-2, rtol=0.0), max_err

    print("KERNEL_OK")
</pallas_src>

<mosaic_0001>
module attributes {stable_mosaic.version = 11 : i64} {
  func.func @generator_kernel(%arg0: i32, %arg1: memref<16x128xbf16, #tpu.memory_space<vmem>>, %arg2: memref<128x128xbf16, #tpu.memory_space<vmem>>, %arg3: memref<1x128xf32, #tpu.memory_space<vmem>>, %arg4: memref<128x256xbf16, #tpu.memory_space<vmem>>, %arg5: memref<1x256xf32, #tpu.memory_space<vmem>>, %arg6: memref<256x896xbf16, #tpu.memory_space<vmem>>, %arg7: memref<1x896xf32, #tpu.memory_space<vmem>>, %arg8: memref<16x896xf32, #tpu.memory_space<vmem>>) attributes {dimension_semantics = [#tpu.dimension_semantics<parallel>], iteration_bounds = array<i64: 1>, scalar_prefetch = 0 : i64, scratch_operands = 0 : i64, tpu.core_type = #tpu.core_type<tc>, window_params = [{transform_indices = @transform_0, window_bounds = array<i64: 16, 128>}, {pipeline_mode = #tpu.pipeline_mode<synchronous>, transform_indices = @transform_1, window_bounds = array<i64: 128, 128>}, {pipeline_mode = #tpu.pipeline_mode<synchronous>, transform_indices = @transform_2, window_bounds = array<i64: 1, 128>}, {pipeline_mode = #tpu.pipeline_mode<synchronous>, transform_indices = @transform_3, window_bounds = array<i64: 128, 256>}, {pipeline_mode = #tpu.pipeline_mode<synchronous>, transform_indices = @transform_4, window_bounds = array<i64: 1, 256>}, {pipeline_mode = #tpu.pipeline_mode<synchronous>, transform_indices = @transform_5, window_bounds = array<i64: 256, 896>}, {pipeline_mode = #tpu.pipeline_mode<synchronous>, transform_indices = @transform_6, window_bounds = array<i64: 1, 896>}, {transform_indices = @transform_7, window_bounds = array<i64: 16, 896>}]} {
    %c0 = arith.constant 0 : index
    %c0_0 = arith.constant 0 : index
    %0 = vector.load %arg1[%c0, %c0_0] : memref<16x128xbf16, #tpu.memory_space<vmem>>, vector<16x128xbf16>
    %c0_1 = arith.constant 0 : index
    %c0_2 = arith.constant 0 : index
    %1 = vector.load %arg2[%c0_1, %c0_2] : memref<128x128xbf16, #tpu.memory_space<vmem>>, vector<128x128xbf16>
    %cst = arith.constant dense<0.000000e+00> : vector<16x128xf32>
    %2 = tpu.matmul %0, %1, %cst {dimension_numbers = #tpu.dot_dimension_numbers<[1], [0], [0], [1], [0, 0, 1, 1], [], []>} : vector<16x128xbf16>, vector<128x128xbf16>, vector<16x128xf32> -> vector<16x128xf32>
    %c0_3 = arith.constant 0 : index
    %c0_4 = arith.constant 0 : index
    %3 = vector.load %arg3[%c0_3, %c0_4] : memref<1x128xf32, #tpu.memory_space<vmem>>, vector<1x128xf32>
    %4 = vector.broadcast %3 : vector<1x128xf32> to vector<16x128xf32>
    %5 = arith.addf %2, %4 : vector<16x128xf32>
    %6 = arith.negf %5 : vector<16x128xf32>
    %7 = math.exp %6 : vector<16x128xf32>
    %cst_5 = arith.constant 1.000000e+00 : f32
    %8 = vector.broadcast %cst_5 : f32 to vector<16x128xf32>
    %9 = arith.addf %8, %7 : vector<16x128xf32>
    %10 = arith.divf %8, %9 : vector<16x128xf32>
    %11 = arith.truncf %10 : vector<16x128xf32> to vector<16x128xbf16>
    %c0_6 = arith.constant 0 : index
    %c0_7 = arith.constant 0 : index
    %12 = vector.load %arg4[%c0_6, %c0_7] : memref<128x256xbf16, #tpu.memory_space<vmem>>, vector<128x256xbf16>
    %cst_8 = arith.constant dense<0.000000e+00> : vector<16x256xf32>
    %13 = tpu.matmul %11, %12, %cst_8 {dimension_numbers = #tpu.dot_dimension_numbers<[1], [0], [0], [1], [0, 0, 1, 1], [], []>} : vector<16x128xbf16>, vector<128x256xbf16>, vector<16x256xf32> -> vector<16x256xf32>
    %c0_9 = arith.constant 0 : index
    %c0_10 = arith.constant 0 : index
    %14 = vector.load %arg5[%c0_9, %c0_10] : memref<1x256xf32, #tpu.memory_space<vmem>>, vector<1x256xf32>
    %15 = vector.broadcast %14 : vector<1x256xf32> to vector<16x256xf32>
    %16 = arith.addf %13, %15 : vector<16x256xf32>
    %17 = arith.negf %16 : vector<16x256xf32>
    %18 = math.exp %17 : vector<16x256xf32>
    %cst_11 = arith.constant 1.000000e+00 : f32
    %19 = vector.broadcast %cst_11 : f32 to vector<16x256xf32>
    %20 = arith.addf %19, %18 : vector<16x256xf32>
    %21 = arith.divf %19, %20 : vector<16x256xf32>
    %22 = arith.truncf %21 : vector<16x256xf32> to vector<16x256xbf16>
    %c0_12 = arith.constant 0 : index
    %c0_13 = arith.constant 0 : index
    %23 = vector.load %arg6[%c0_12, %c0_13] : memref<256x896xbf16, #tpu.memory_space<vmem>>, vector<256x896xbf16>
    %cst_14 = arith.constant dense<0.000000e+00> : vector<16x896xf32>
    %24 = tpu.matmul %22, %23, %cst_14 {dimension_numbers = #tpu.dot_dimension_numbers<[1], [0], [0], [1], [0, 0, 1, 1], [], []>} : vector<16x256xbf16>, vector<256x896xbf16>, vector<16x896xf32> -> vector<16x896xf32>
    %c0_15 = arith.constant 0 : index
    %c0_16 = arith.constant 0 : index
    %25 = vector.load %arg7[%c0_15, %c0_16] : memref<1x896xf32, #tpu.memory_space<vmem>>, vector<1x896xf32>
    %26 = vector.broadcast %25 : vector<1x896xf32> to vector<16x896xf32>
    %27 = arith.addf %24, %26 : vector<16x896xf32>
    %28 = arith.negf %27 : vector<16x896xf32>
    %29 = math.exp %28 : vector<16x896xf32>
    %cst_17 = arith.constant 1.000000e+00 : f32
    %30 = vector.broadcast %cst_17 : f32 to vector<16x896xf32>
    %31 = arith.addf %30, %29 : vector<16x896xf32>
    %32 = arith.divf %30, %31 : vector<16x896xf32>
    %c0_18 = arith.constant 0 : index
    %c0_19 = arith.constant 0 : index
    %33 = vector.load %arg8[%c0_18, %c0_19] : memref<16x896xf32, #tpu.memory_space<vmem>>, vector<16x896xf32>
    tpu.vector_store %arg8[%c0_18, %c0_19], %32 {strides = array<i32>} : memref<16x896xf32, #tpu.memory_space<vmem>>, vector<16x896xf32>,
    return
  }
  func.func @transform_0(%arg0: i32) -> (i32, i32) {
    %c0_i32 = arith.constant 0 : i32
    %c0_i32_0 = arith.constant 0 : i32
    return %arg0, %c0_i32 : i32, i32
  }
  func.func @transform_1(%arg0: i32) -> (i32, i32) {
    %c0_i32 = arith.constant 0 : i32
    %c0_i32_0 = arith.constant 0 : i32
    %c0_i32_1 = arith.constant 0 : i32
    return %c0_i32, %c0_i32_0 : i32, i32
  }
  func.func @transform_2(%arg0: i32) -> (i32, i32) {
    %c0_i32 = arith.constant 0 : i32
    %c0_i32_0 = arith.constant 0 : i32
    %c0_i32_1 = arith.constant 0 : i32
    return %c0_i32, %c0_i32_0 : i32, i32
  }
  func.func @transform_3(%arg0: i32) -> (i32, i32) {
    %c0_i32 = arith.constant 0 : i32
    %c0_i32_0 = arith.constant 0 : i32
    %c0_i32_1 = arith.constant 0 : i32
    return %c0_i32, %c0_i32_0 : i32, i32
  }
  func.func @transform_4(%arg0: i32) -> (i32, i32) {
    %c0_i32 = arith.constant 0 : i32
    %c0_i32_0 = arith.constant 0 : i32
    %c0_i32_1 = arith.constant 0 : i32
    return %c0_i32, %c0_i32_0 : i32, i32
  }
  func.func @transform_5(%arg0: i32) -> (i32, i32) {
    %c0_i32 = arith.constant 0 : i32
    %c0_i32_0 = arith.constant 0 : i32
    %c0_i32_1 = arith.constant 0 : i32
    return %c0_i32, %c0_i32_0 : i32, i32
  }
  func.func @transform_6(%arg0: i32) -> (i32, i32) {
    %c0_i32 = arith.constant 0 : i32
    %c0_i32_0 = arith.constant 0 : i32
    %c0_i32_1 = arith.constant 0 : i32
    return %c0_i32, %c0_i32_0 : i32, i32
  }
  func.func @transform_7(%arg0: i32) -> (i32, i32) {
    %c0_i32 = arith.constant 0 : i32
    %c0_i32_0 = arith.constant 0 : i32
    return %arg0, %c0_i32 : i32, i32
  }
}

</mosaic_0001>

<bundles_post_ra>
// kernel: tpu_custom_call.1
= control target key start
LH: loop header
LB: loop body
LE: loop exit
PB: predicated region body
PF: predicated region fallthrough
CT: control target
= control target key end

     0   :  { %12 = vsyncpa [#allocation3], 0  ;;  %s2925_s0 = inlined_call_operand.hbm [shape: bf16[16,128], index: 0, kind: input, shape index: {}]   ;;  %s2926_s1 = inlined_call_operand.hbm [shape: bf16[128,128], index: 1, kind: input, shape index: {}]   ;;  %s2927_s2 = inlined_call_operand.vmem [shape: f32[1,128], index: 2, kind: input, shape index: {}]   ;;  %s2928_s3 = inlined_call_operand.hbm [shape: bf16[128,256], index: 3, kind: input, shape index: {}]   ;;  %s2929_s4 = inlined_call_operand.vmem [shape: f32[1,256], index: 4, kind: input, shape index: {}]   ;;  %s2930_s5 = inlined_call_operand.hbm [shape: bf16[256,896], index: 5, kind: input, shape index: {}]   ;;  %s2931_s6 = inlined_call_operand.hbm [shape: f32[1,896], index: 6, kind: input, shape index: {}]   ;;  %s2932_s7 = inlined_call_operand.hbm [shape: f32[16,896], index: 7, kind: output, shape index: {}]  }
   0x1   :  { %13 = vsyncpa [#allocation6], 0 }
   0x2   :  { %14 = vsyncpa [#allocation9], 0 }
   0x3   :  { %15 = vsyncpa [#allocation4], 0  ;;  %s33_s26 = sshll.u32 %s2926_s1, 4  ;;  %s2609_s27 = smov [#allocation5]   ;;  %s34_s26 = int_to_ptr.hbm [resolvable:$true] %s33_s26 }
   0x4   :  { %s35_s28 = sshll.u32 %s2609_s27, 4  ;;  %s63_s8 = sshll.u32 %s2930_s5, 4  ;;  %s36_s28 = int_to_ptr.vmem [resolvable:$true] %s35_s28  ;;  %s64_s8 = int_to_ptr.hbm [resolvable:$true] %s63_s8 }
   0x5   :  { %s2610_s9 = smov 64   ;;  %s2611_s10 = smov 4  }
   0x6   :  { %41 = dma.hbm_to_vmem [thread:$0]  %s34_s26, 1024, %s36_s28, [#allocation6], %s2610_s9, %s2610_s9, %s2611_s10  }
   0x7   :  { %s2612_s11 = smov [#allocation8]   ;;  %s2613_s13 = smov 448  }
   0x8   :  { %s65_s12 = sshll.u32 %s2612_s11, 4  ;;  %s2614_s14 = smov 28   ;;  %s66_s12 = int_to_ptr.vmem [resolvable:$true] %s65_s12 }
   0x9   :  { %71 = dma.hbm_to_vmem [thread:$0]  %s64_s8, 14336, %s66_s12, [#allocation9], %s2613_s13, %s2613_s13, %s2614_s14  }
   0xa   :  { %s20_s16 = sshll.u32 %s2925_s0, 4  ;;  %s2615_s17 = smov [#allocation2]   ;;  %s21_s16 = int_to_ptr.hbm [resolvable:$true] %s20_s16 }
   0xb   :  { %s22_s18 = sshll.u32 %s2615_s17, 4  ;;  %s48_s20 = sshll.u32 %s2928_s3, 4  ;;  %s23_s18 = int_to_ptr.vmem [resolvable:$true] %s22_s18  ;;  %s49_s20 = int_to_ptr.hbm [resolvable:$true] %s48_s20 }
   0xc   :  { %28 = dma.hbm_to_vmem [thread:$0]  %s21_s16, 128, %s23_s18, [#allocation3], %s2610_s9, %s2610_s9, %s2611_s10  }
   0xd   :  { %s2616_s21 = smov [#allocation7]   ;;  %s2617_s23 = smov 128  }
   0xe   :  { %s50_s22 = sshll.u32 %s2616_s21, 4  ;;  %s2618_s24 = smov 8   ;;  %s51_s22 = int_to_ptr.vmem [resolvable:$true] %s50_s22 }
   0xf   :  { %56 = dma.hbm_to_vmem [thread:$0]  %s49_s20, 2048, %s51_s22, [#allocation6], %s2617_s23, %s2617_s23, %s2618_s24  }
  0x10   :  { %s77_s0 = sshll.u32 %s2931_s6, 4  ;;  %s2619_s27 = smov [#allocation10]   ;;  %s78_s0 = int_to_ptr.hbm [resolvable:$true] %s77_s0 }
  0x11   :  { %s79_s28 = sshll.u32 %s2619_s27, 4  ;;  %s80_s28 = int_to_ptr.vmem [resolvable:$true] %s79_s28 }
  0x12   :  { %82 = dma.hbm_to_vmem [thread:$0]  %s78_s0, 112, %s80_s28, [#allocation9]  }
  0x13   :  { %2601 = dma.done.wait [#allocation3], 128  }
  0x14   :  { %2602 = vsyncadd [#allocation3], 4294967168 }
  0x15   :  { %2603 = dma.done.wait [#allocation6], 3072  }
  0x16   :  { %2604 = vsyncadd [#allocation6], 4294964224 }
  0x17   :  { %2605 = dma.done.wait [#allocation9], 14448  }
  0x18   :  { %2606 = vsyncadd [#allocation9], 4294952848  ;;  %v2233_v0 = vld [vmem:[#allocation5 + $0x38] sm:$0xff]  ;;  %v2232_v1 = vld [vmem:[#allocation5 + $0x30] sm:$0xff]  ;;  %s1642_s10 = sshll.u32 %s2932_s7, 4  ;;  %s2621_s11 = smov 896   ;;  %s1643_s10 = int_to_ptr.hbm [resolvable:$true] %s1642_s10 }
  0x19   :  { %179 = vmatpush.bf16.msra.mxu0 %v2233_v0  ;;  %v2231_v2 = vld [vmem:[#allocation5 + $0x28] sm:$0xff]  ;;  %v2230_v3 = vld [vmem:[#allocation5 + $0x20] sm:$0xff]  ;;  %v2229_v4 = vld [vmem:[#allocation5 + $0x18] sm:$0xff]  ;;  %s2622_s12 = smov 56  }
  0x1a   :  { %v2228_v5 = vld [vmem:[#allocation5 + $0x10] sm:$0xff]  ;;  %v2227_v6 = vld [vmem:[#allocation5 + $0x8] sm:$0xff]  ;;  %v2226_v7 = vld [vmem:[#allocation5] sm:$0xff] }
  0x1b   :  { %v2225_v8 = vld [vmem:[#allocation2] sm:$0xff]  ;;  %v1753_v9 = vld [vmem:[#allocation7 + $0x70] sm:$0xf]  ;;  %v2248_v11 = vld [vmem:[#allocation7 + $0x74] sm:$0xf] }
  0x1c   :  { %v2249_v10 = vld [vmem:[#allocation7 + $0x74] sm:$0xf0]  ;;  %v1755_v13 = vld [vmem:[#allocation7 + $0x78] sm:$0xf0]  ;;  %v1745_v15 = vld [vmem:[#allocation7 + $0x60] sm:$0xf] }
  0x1d   :  { %180 = vmatpush.bf16.msra.mxu0 %v2232_v1  ;;  %v1754_v12 = vor.u32 %v2249_v10, %v1753_v9  ;;  %v1758_v14 = vor.u32 %v2248_v11, %v1755_v13  ;;  %v2247_v16 = vld [vmem:[#allocation7 + $0x64] sm:$0xf0]  ;;  %v2246_v17 = vld [vmem:[#allocation7 + $0x64] sm:$0xf]  ;;  %v1747_v19 = vld [vmem:[#allocation7 + $0x68] sm:$0xf0] }
  0x1e   :  { %v1746_v18 = vor.u32 %v2247_v16, %v1745_v15  ;;  %v1750_v20 = vor.u32 %v2246_v17, %v1747_v19  ;;  %v1737_v21 = vld [vmem:[#allocation7 + $0x50] sm:$0xf]  ;;  %v2245_v22 = vld [vmem:[#allocation7 + $0x54] sm:$0xf0]  ;;  %v2244_v23 = vld [vmem:[#allocation7 + $0x54] sm:$0xf] }
  0x1f   :  { %334 = vmatpush.bf16.msra.mxu1 %v1754_v12  ;;  %348 = vmatpush.bf16.msra.mxu2 %v1758_v14  ;;  %v1738_v24 = vor.u32 %v2245_v22, %v1737_v21  ;;  %v1739_v25 = vld [vmem:[#allocation7 + $0x58] sm:$0xf0]  ;;  %v1729_v27 = vld [vmem:[#allocation7 + $0x40] sm:$0xf]  ;;  %v2243_v28 = vld [vmem:[#allocation7 + $0x44] sm:$0xf0] }
  0x20   :  { %v1742_v26 = vor.u32 %v2244_v23, %v1739_v25  ;;  %v2242_v29 = vld [vmem:[#allocation7 + $0x44] sm:$0xf]  ;;  %v1730_v30 = vor.u32 %v2243_v28, %v1729_v27  ;;  %v1731_v31 = vld [vmem:[#allocation7 + $0x48] sm:$0xf0]  ;;  %v1721_v33 = vld [vmem:[#allocation7 + $0x30] sm:$0xf] }
  0x21   :  { %181 = vmatpush.bf16.msra.mxu0 %v2231_v2  ;;  %v1734_v32 = vor.u32 %v2242_v29, %v1731_v31  ;;  %v2241_v34 = vld [vmem:[#allocation7 + $0x34] sm:$0xf0]  ;;  %v2240_v35 = vld [vmem:[#allocation7 + $0x34] sm:$0xf]  ;;  %v1723_v37 = vld [vmem:[#allocation7 + $0x38] sm:$0xf0] }
  0x22   :  { %v1722_v36 = vor.u32 %v2241_v34, %v1721_v33  ;;  %v1713_v38 = vld [vmem:[#allocation7 + $0x20] sm:$0xf]  ;;  %v2239_v39 = vld [vmem:[#allocation7 + $0x24] sm:$0xf0]  ;;  %v1726_v40 = vor.u32 %v2240_v35, %v1723_v37  ;;  %v2238_v41 = vld [vmem:[#allocation7 + $0x24] sm:$0xf] }
  0x23   :  { %335 = vmatpush.bf16.msra.mxu1 %v1746_v18  ;;  %349 = vmatpush.bf16.msra.mxu2 %v1750_v20  ;;  %v1715_v42 = vld [vmem:[#allocation7 + $0x28] sm:$0xf0]  ;;  %v1714_v43 = vor.u32 %v2239_v39, %v1713_v38  ;;  %v1705_v45 = vld [vmem:[#allocation7 + $0x10] sm:$0xf]  ;;  %v2237_v46 = vld [vmem:[#allocation7 + $0x14] sm:$0xf0] }
  0x24   :  { %v1718_v44 = vor.u32 %v2238_v41, %v1715_v42  ;;  %v2236_v47 = vld [vmem:[#allocation7 + $0x14] sm:$0xf]  ;;  %v1707_v48 = vld [vmem:[#allocation7 + $0x18] sm:$0xf0]  ;;  %v2376_v49 = vld [vmem:[%s2927_s2] ss:$0 sm:$0xff]  ;;  %v1706_v50 = vor.u32 %v2237_v46, %v1705_v45 }
  0x25   :  { %182 = vmatpush.bf16.msra.mxu0 %v2230_v3  ;;  %v1710_v51 = vor.u32 %v2236_v47, %v1707_v48  ;;  %v1697_v52 = vld [vmem:[#allocation7] sm:$0xf]  ;;  %v2235_v53 = vld [vmem:[#allocation7 + $0x4] sm:$0xf0]  ;;  %v2234_v55 = vld [vmem:[#allocation7 + $0x4] sm:$0xf] }
  0x26   :  { %v1699_v56 = vld [vmem:[#allocation7 + $0x8] sm:$0xf0]  ;;  %v1698_v58 = vor.u32 %v2235_v53, %v1697_v52  ;;  %v1961_v63 = vld [vmem:[#allocation8 + $0x188] sm:$0xf]  ;;  %v2302_v0 = vld [vmem:[#allocation8 + $0x1a0] sm:$0xf0] }
  0x27   :  { %336 = vmatpush.bf16.msra.mxu1 %v1738_v24  ;;  %350 = vmatpush.bf16.msra.mxu2 %v1742_v26  ;;  %v1702_v60 = vor.u32 %v2234_v55, %v1699_v56  ;;  %v2299_v1 = vld [vmem:[#allocation8 + $0x18c] sm:$0xf]  ;;  %v1962_v2 = vor.u32 %v2302_v0, %v1961_v63  ;;  %v1963_v3 = vld [vmem:[#allocation8 + $0x1a4] sm:$0xf0]  ;;  %v2292_v9 = vld [vmem:[#allocation8 + $0x154] sm:$0xf] }
  0x28   :  { %v1935_v10 = vld [vmem:[#allocation8 + $0x16c] sm:$0xf0]  ;;  %v2185_v13 = vld [vmem:[#allocation8 + $0x348] sm:$0xf]  ;;  %v2358_v14 = vld [vmem:[#allocation8 + $0x360] sm:$0xf0] }
  0x29   :  { %183 = vmatpush.bf16.msra.mxu0 %v2229_v4  ;;  %v1933_v4 = vld [vmem:[#allocation8 + $0x150] sm:$0xf]  ;;  %1160 = vmatpush.bf16.msra.mxu3 %v1962_v2  ;;  %v1938_v15 = vor.u32 %v2292_v9, %v1935_v10  ;;  %v2186_v16 = vor.u32 %v2358_v14, %v2185_v13  ;;  %v2355_v17 = vld [vmem:[#allocation8 + $0x34c] sm:$0xf]  ;;  %v2187_v18 = vld [vmem:[#allocation8 + $0x364] sm:$0xf0] }
  0x2a   :  { %v1905_v19 = vld [vmem:[#allocation8 + $0x118] sm:$0xf]  ;;  %v2288_v20 = vld [vmem:[#allocation8 + $0x130] sm:$0xf0]  ;;  %v2190_v21 = vor.u32 %v2355_v17, %v2187_v18  ;;  %v2285_v22 = vld [vmem:[#allocation8 + $0x11c] sm:$0xf] }
  0x2b   :  { %337 = vmatpush.bf16.msra.mxu1 %v1730_v30  ;;  %351 = vmatpush.bf16.msra.mxu2 %v1734_v32  ;;  %v1907_v23 = vld [vmem:[#allocation8 + $0x134] sm:$0xf0]  ;;  %v2157_v24 = vld [vmem:[#allocation8 + $0x310] sm:$0xf]  ;;  %v1906_v25 = vor.u32 %v2288_v20, %v1905_v19  ;;  %v2351_v26 = vld [vmem:[#allocation8 + $0x328] sm:$0xf0] }
  0x2c   :  { %v2348_v27 = vld [vmem:[#allocation8 + $0x314] sm:$0xf]  ;;  %v1910_v28 = vor.u32 %v2285_v22, %v1907_v23  ;;  %v2158_v29 = vor.u32 %v2351_v26, %v2157_v24  ;;  %v2159_v30 = vld [vmem:[#allocation8 + $0x32c] sm:$0xf0]  ;;  %v1877_v31 = vld [vmem:[#allocation8 + $0xe0] sm:$0xf] }
  0x2d   :  { %184 = vmatpush.bf16.msra.mxu0 %v2228_v5  ;;  %v2295_v5 = vld [vmem:[#allocation8 + $0x168] sm:$0xf0]  ;;  %v2281_v32 = vld [vmem:[#allocation8 + $0xf8] sm:$0xf0]  ;;  %v2162_v33 = vor.u32 %v2348_v27, %v2159_v30  ;;  %v2278_v34 = vld [vmem:[#allocation8 + $0xe4] sm:$0xf] }
  0x2e   :  { %v1934_v12 = vor.u32 %v2295_v5, %v1933_v4  ;;  %v1879_v35 = vld [vmem:[#allocation8 + $0xfc] sm:$0xf0]  ;;  %v2344_v38 = vld [vmem:[#allocation8 + $0x2f0] sm:$0xf0]  ;;  %v2341_v39 = vld [vmem:[#allocation8 + $0x2dc] sm:$0xf] }
  0x2f   :  { %338 = vmatpush.bf16.msra.mxu1 %v1722_v36  ;;  %352 = vmatpush.bf16.msra.mxu2 %v1726_v40  ;;  %v2129_v36 = vld [vmem:[#allocation8 + $0x2d8] sm:$0xf]  ;;  %v1882_v46 = vor.u32 %v2278_v34, %v1879_v35  ;;  %v1849_v48 = vld [vmem:[#allocation8 + $0xa8] sm:$0xf]  ;;  %v2101_v9 = vld [vmem:[#allocation8 + $0x2a0] sm:$0xf] }
  0x30   :  { %1161 = vmatpush.bf16.msra.mxu3 %v1934_v12  ;;  %v2131_v40 = vld [vmem:[#allocation8 + $0x2f4] sm:$0xf0]  ;;  %v2337_v10 = vld [vmem:[#allocation8 + $0x2b8] sm:$0xf0]  ;;  %v2334_v12 = vld [vmem:[#allocation8 + $0x2a4] sm:$0xf] }
  0x31   :  { %185 = vmatpush.bf16.msra.mxu0 %v2227_v6  ;;  %v2134_v47 = vor.u32 %v2341_v39, %v2131_v40  ;;  %v2103_v13 = vld [vmem:[#allocation8 + $0x2bc] sm:$0xf0]  ;;  %v2264_v18 = vld [vmem:[#allocation8 + $0x74] sm:$0xf]  ;;  %v1823_v19 = vld [vmem:[#allocation8 + $0x8c] sm:$0xf0] }
  0x32   :  { %v2106_v14 = vor.u32 %v2334_v12, %v2103_v13  ;;  %v1826_v20 = vor.u32 %v2264_v18, %v1823_v19  ;;  %v2330_v22 = vld [vmem:[#allocation8 + $0x280] sm:$0xf0]  ;;  %v2327_v24 = vld [vmem:[#allocation8 + $0x26c] sm:$0xf]  ;;  %v1793_v27 = vld [vmem:[#allocation8 + $0x38] sm:$0xf] }
  0x33   :  { %339 = vmatpush.bf16.msra.mxu1 %v1714_v43  ;;  %353 = vmatpush.bf16.msra.mxu2 %v1718_v44  ;;  %v1878_v43 = vor.u32 %v2281_v32, %v1877_v31  ;;  %v2130_v44 = vor.u32 %v2344_v38, %v2129_v36  ;;  %v2257_v30 = vld [vmem:[#allocation8 + $0x3c] sm:$0xf]  ;;  %v1795_v31 = vld [vmem:[#allocation8 + $0x54] sm:$0xf0]  ;;  %v2323_v34 = vld [vmem:[#allocation8 + $0x248] sm:$0xf0] }
  0x34   :  { %1162 = vmatpush.bf16.msra.mxu3 %v1906_v25  ;;  %v2075_v25 = vld [vmem:[#allocation8 + $0x284] sm:$0xf0]  ;;  %v1798_v32 = vor.u32 %v2257_v30, %v1795_v31  ;;  %v2320_v36 = vld [vmem:[#allocation8 + $0x234] sm:$0xf]  ;;  %v1765_v39 = vld [vmem:[#allocation8] sm:$0xf] }
  0x35   :  { %186 = vmatpush.bf16.msra.mxu0 %v2226_v7  ;;  %v2078_v26 = vor.u32 %v2327_v24, %v2075_v25  ;;  %v2253_v40 = vld [vmem:[#allocation8 + $0x18] sm:$0xf0]  ;;  %v2352_v18 = vld [vmem:[#allocation8 + $0x330] sm:$0xf0]  ;;  %v2282_v24 = vld [vmem:[#allocation8 + $0x100] sm:$0xf0] }
  0x36   :  { %v2345_v30 = vld [vmem:[#allocation8 + $0x2f8] sm:$0xf0]  ;;  %v2691_v31 = vld [vmem:[%s2929_s4] sm:$0x3]  ;;  %s2620_s4 = smov [#allocation11]  }
  0x37   :  { %340 = vmatpush.bf16.msra.mxu1 %v1706_v50  ;;  %354 = vmatpush.bf16.msra.mxu2 %v1710_v51  ;;  %s1640_s30 = sshll.u32 %s2620_s4, 4  ;;  %s1641_s30 = int_to_ptr.vmem [resolvable:$true] %s1640_s30 }
  0x38   :  { %187 = vmatmul.bf16.vlgmr.msra.gmra.mxu0 %v2225_v8  ;;  %v1966_v8 = vor.u32 %v2299_v1, %v1963_v3  ;;  %1163 = vmatpush.bf16.msra.mxu3 %v1878_v43  ;;  %v1767_v43 = vld [vmem:[#allocation8 + $0x1c] sm:$0xf0] }
  0x39   :  { %1174 = vmatpush.bf16.msrb.mxu0 %v2186_v16  ;;  %v2267_v16 = vld [vmem:[#allocation8 + $0x88] sm:$0xf0] }
  0x3b   :  { %341 = vmatpush.bf16.msra.mxu1 %v1698_v58  ;;  %355 = vmatpush.bf16.msra.mxu2 %v1702_v60 }
  0x3d   :  { %1175 = vmatpush.bf16.msrb.mxu0 %v2158_v29 }
  0x3f   :  { %1188 = vmatpush.bf16.msrb.mxu1 %v1966_v8  ;;  %1202 = vmatpush.bf16.msrb.mxu2 %v2190_v21  ;;  %v2073_v21 = vld [vmem:[#allocation8 + $0x268] sm:$0xf] }
  0x40   :  { %v2074_v23 = vor.u32 %v2330_v22, %v2073_v21  ;;  %v2167_v21 = vld [vmem:[#allocation8 + $0x334] sm:$0xf0] }
  0x41   :  { %1176 = vmatpush.bf16.msrb.mxu0 %v2130_v44  ;;  %v1969_v44 = vld [vmem:[#allocation8 + $0x190] sm:$0xf] }
  0x43   :  { %1189 = vmatpush.bf16.msrb.mxu1 %v1938_v15  ;;  %1203 = vmatpush.bf16.msrb.mxu2 %v2162_v33  ;;  %v1821_v15 = vld [vmem:[#allocation8 + $0x70] sm:$0xf] }
  0x44   :  { %v1822_v17 = vor.u32 %v2267_v16, %v1821_v15  ;;  %v2045_v33 = vld [vmem:[#allocation8 + $0x230] sm:$0xf]  ;;  %v1915_v15 = vld [vmem:[#allocation8 + $0x13c] sm:$0xf0] }
  0x45   :  { %v2046_v35 = vor.u32 %v2323_v34, %v2045_v33  ;;  %v2342_v33 = vld [vmem:[#allocation8 + $0x2e4] sm:$0xf]  ;;  %v2139_v34 = vld [vmem:[#allocation8 + $0x2fc] sm:$0xf0] }
  0x47   :  { %1190 = vmatpush.bf16.msrb.mxu1 %v1910_v28  ;;  %1204 = vmatpush.bf16.msrb.mxu2 %v2134_v47  ;;  %v2260_v28 = vld [vmem:[#allocation8 + $0x50] sm:$0xf0]  ;;  %v2017_v47 = vld [vmem:[#allocation8 + $0x1f8] sm:$0xf] }
  0x48   :  { %v1794_v29 = vor.u32 %v2260_v28, %v1793_v27  ;;  %v1887_v27 = vld [vmem:[#allocation8 + $0x104] sm:$0xf0] }
  0x4b   :  { %1191 = vmatpush.bf16.msrb.mxu1 %v1882_v46  ;;  %1205 = vmatpush.bf16.msrb.mxu2 %v2106_v14  ;;  %v2303_v46 = vld [vmem:[#allocation8 + $0x1a8] sm:$0xf0]  ;;  %v2286_v14 = vld [vmem:[#allocation8 + $0x124] sm:$0xf] }
  0x4c   :  { %v1918_v16 = vor.u32 %v2286_v14, %v1915_v15  ;;  %v1773_v15 = vld [vmem:[#allocation8 + $0x8] sm:$0xf] }
  0x4f   :  { %1206 = vmatpush.bf16.msrb.mxu2 %v2078_v26  ;;  %v2279_v26 = vld [vmem:[#allocation8 + $0xec] sm:$0xf] }
  0x50   :  { %v1890_v28 = vor.u32 %v2279_v26, %v1887_v27 }
  0xb5   :  { %v188_v54 = vpop.f32.mrf.mxu0 }
  0xb6   :  { %v189_v57 = vadd.f32 %v2376_v49, %v188_v54 }
  0xb8   :  { %v1693_v59 = vmul.f32 -1.442695, %v189_v57 }
  0xba   :  { %2377 = vpow2.f32 %v1693_v59 }
  0xbd   :  { %v190_v61 = vpop.f32.mrf.mxu0 }
  0xbe   :  { %v191_v62 = vadd.f32 %v2376_v49, %v190_v61  ;;  %v2274_v49 = vld [vmem:[#allocation8 + $0xc0] sm:$0xf0] }
  0xbf   :  { %v1850_v51 = vor.u32 %v2274_v49, %v1849_v48  ;;  %v2316_v48 = vld [vmem:[#allocation8 + $0x210] sm:$0xf0]  ;;  %v1970_v49 = vor.u32 %v2303_v46, %v1969_v44  ;;  %v2338_v44 = vld [vmem:[#allocation8 + $0x2c0] sm:$0xf0]  ;;  %v2335_v46 = vld [vmem:[#allocation8 + $0x2ac] sm:$0xf] }
  0xc0   :  { %v2378_v6 = vpop.eup %2377  ;;  %v1694_v7 = vmul.f32 -1.442695, %v191_v62 }
  0xc1   :  { %v2681_v11 = vadd.f32 1.0, %v2378_v6  ;;  %1164 = vmatpush.bf16.msra.mxu3 %v1850_v51  ;;  %v2271_v6 = vld [vmem:[#allocation8 + $0xac] sm:$0xf]  ;;  %v2300_v51 = vld [vmem:[#allocation8 + $0x194] sm:$0xf] }
  0xc2   :  { %2379 = vpow2.f32 %v1694_v7  ;;  %v1851_v7 = vld [vmem:[#allocation8 + $0xc4] sm:$0xf0] }
  0xc3   :  { %2381 = vrcp.f32 %v2681_v11  ;;  %vm206_vm1 = vweird.f32 %v2681_v11  ;;  %v212_v57 = vand.u32 2147483648, %v2681_v11  ;;  %v210_v59 = vand.u32 2147483647, %v2681_v11 }
  0xc4   :  { %v1854_v8 = vor.u32 %v2271_v6, %v1851_v7  ;;  %v2359_v6 = vld [vmem:[#allocation8 + $0x368] sm:$0xf0]  ;;  %v2356_v7 = vld [vmem:[#allocation8 + $0x354] sm:$0xf] }
  0xc5   :  { %v213_v0 = vor.u32 1.1754944e-38, %v212_v57  ;;  %vm211_vm6 = vcmp.eq.f32.partialorder %v210_v59, 8.507059e+37  ;;  %1165 = vmatpush.bf16.msra.mxu3 %v1822_v17  ;;  %v1941_v57 = vld [vmem:[#allocation8 + $0x158] sm:$0xf] }
  0xc6   :  { %1192 = vmatpush.bf16.msrb.mxu1 %v1854_v8  ;;  %v2165_v17 = vld [vmem:[#allocation8 + $0x318] sm:$0xf] }
  0xc7   :  { %v2166_v19 = vor.u32 %v2352_v18, %v2165_v17 }
  0xc8   :  { %v2380_v37 = vpop.eup %2379 }
  0xc9   :  { %v2382_v41 = vpop.eup %2381  ;;  %v200_v42 = vadd.f32 1.0, %v2380_v37  ;;  %1166 = vmatpush.bf16.msra.mxu3 %v1794_v29  ;;  %v2047_v37 = vld [vmem:[#allocation8 + $0x24c] sm:$0xf0]  ;;  %v2137_v29 = vld [vmem:[#allocation8 + $0x2e0] sm:$0xf] }
  0xca   :  { %v202_v45 = vmul.f32 %v2382_v41, %v2681_v11  ;;  %vm207_vm0 = vweird.f32 %v2382_v41  ;;  %v2102_v11 = vor.u32 %v2337_v10, %v2101_v9  ;;  %1193 = vmatpush.bf16.msrb.mxu1 %v1826_v20  ;;  %v2050_v38 = vor.u32 %v2320_v36, %v2047_v37  ;;  %v2195_v9 = vld [vmem:[#allocation8 + $0x36c] sm:$0xf0]  ;;  %v1913_v10 = vld [vmem:[#allocation8 + $0x120] sm:$0xf]  ;;  %v2349_v20 = vld [vmem:[#allocation8 + $0x31c] sm:$0xf] }
  0xcb   :  { %2383 = vrcp.f32 %v200_v42  ;;  %v227_v58 = vand.u32 2147483648, %v200_v42  ;;  %v225_v61 = vand.u32 2147483647, %v200_v42  ;;  %vm208_vm3 = vmor %vm206_vm1, %vm207_vm0  ;;  %vm221_vm4 = vweird.f32 %v200_v42  ;;  %v1857_v36 = vld [vmem:[#allocation8 + $0xb0] sm:$0xf] }
  0xcc   :  { %v203_v50 = vsub.f32 1.0, %v202_v45  ;;  %1177 = vmatpush.bf16.msrb.mxu0 %v2102_v11  ;;  %1207 = vmatpush.bf16.msrb.mxu2 %v2050_v38  ;;  %v2289_v11 = vld [vmem:[#allocation8 + $0x138] sm:$0xf0]  ;;  %v2198_v12 = vor.u32 %v2356_v7, %v2195_v9  ;;  %v2170_v22 = vor.u32 %v2349_v20, %v2167_v21  ;;  %v2275_v37 = vld [vmem:[#allocation8 + $0xc8] sm:$0xf0] }
  0xcd   :  { %v228_v1 = vor.u32 1.1754944e-38, %v227_v58  ;;  %vm226_vm7 = vcmp.eq.f32.partialorder %v225_v61, 8.507059e+37  ;;  %v2296_v58 = vld [vmem:[#allocation8 + $0x170] sm:$0xf0]  ;;  %v2309_v61 = vld [vmem:[#allocation8 + $0x1d8] sm:$0xf0]  ;;  %v1914_v13 = vor.u32 %v2289_v11, %v1913_v10  ;;  %v1858_v38 = vor.u32 %v2275_v37, %v1857_v36 }
  0xce   :  { %v204_v52 = vmul.f32 %v2382_v41, %v203_v50  ;;  %1194 = vmatpush.bf16.msrb.mxu1 %v1798_v32  ;;  %v2018_v50 = vor.u32 %v2316_v48, %v2017_v47  ;;  %v1942_v59 = vor.u32 %v2296_v58, %v1941_v57  ;;  %v2138_v32 = vor.u32 %v2345_v30, %v2137_v29  ;;  %v2111_v47 = vld [vmem:[#allocation8 + $0x2c4] sm:$0xf0]  ;;  %v2081_v57 = vld [vmem:[#allocation8 + $0x270] sm:$0xf]  ;;  %v2331_v58 = vld [vmem:[#allocation8 + $0x288] sm:$0xf0] }
  0xcf   :  { %v2114_v48 = vor.u32 %v2335_v46, %v2111_v47  ;;  %v2053_v7 = vld [vmem:[#allocation8 + $0x238] sm:$0xf]  ;;  %v2321_v11 = vld [vmem:[#allocation8 + $0x23c] sm:$0xf]  ;;  %v1775_v20 = vld [vmem:[#allocation8 + $0x24] sm:$0xf0] }
  0xd0   :  { %v205_v55 = vadd.f32 %v2382_v41, %v204_v52  ;;  %1178 = vmatpush.bf16.msrb.mxu0 %v2074_v23  ;;  %v1971_v52 = vld [vmem:[#allocation8 + $0x1ac] sm:$0xf0]  ;;  %v1885_v23 = vld [vmem:[#allocation8 + $0xe8] sm:$0xf]  ;;  %v2314_v29 = vld [vmem:[#allocation8 + $0x204] sm:$0xf] }
  0xd1   :  { %v2384_v53 = vpop.eup %2383  ;;  %v1886_v25 = vor.u32 %v2282_v24, %v1885_v23  ;;  %v2025_v24 = vld [vmem:[#allocation8 + $0x200] sm:$0xf] }
  0xd2   :  { %v217_v54 = vmul.f32 %v2384_v53, %v200_v42  ;;  %vm222_vm2 = vweird.f32 %v2384_v53  ;;  %v209_v62 = vsel %vm208_vm3, %v2382_v41, %v205_v55  ;;  %v1766_v41 = vor.u32 %v2253_v40, %v1765_v39  ;;  %v2250_v42 = vld [vmem:[#allocation8 + $0x4] sm:$0xf]  ;;  %v2019_v55 = vld [vmem:[#allocation8 + $0x214] sm:$0xf0]  ;;  %v2272_v39 = vld [vmem:[#allocation8 + $0xb4] sm:$0xf] }
  0xd3   :  { %vm223_vm5 = vmor %vm221_vm4, %vm222_vm2  ;;  %v214_v3 = vsel %vm211_vm6, %v213_v0, %v209_v62  ;;  %v1770_v45 = vor.u32 %v2250_v42, %v1767_v43  ;;  %v2293_v62 = vld [vmem:[#allocation8 + $0x15c] sm:$0xf]  ;;  %v1943_v0 = vld [vmem:[#allocation8 + $0x174] sm:$0xf0] }
  0xd4   :  { %v218_v56 = vsub.f32 1.0, %v217_v54  ;;  %1179 = vmatpush.bf16.msrb.mxu0 %v2046_v35  ;;  %1167 = vmatpush.bf16.msra.mxu3 %v1766_v41  ;;  %v1974_v54 = vor.u32 %v2300_v51, %v1971_v52  ;;  %v2142_v35 = vor.u32 %v2342_v33, %v2139_v34  ;;  %v1859_v40 = vld [vmem:[#allocation8 + $0xcc] sm:$0xf0]  ;;  %v250_v41 = vperm.slane %v2691_v31, 0  ;;  %v2109_v43 = vld [vmem:[#allocation8 + $0x2a8] sm:$0xf] }
  0xd5   :  { %1195 = vmatpush.bf16.msrb.mxu1 %v1770_v45  ;;  %v1862_v42 = vor.u32 %v2272_v39, %v1859_v40  ;;  %v2110_v45 = vor.u32 %v2338_v44, %v2109_v43  ;;  %v2027_v30 = vld [vmem:[#allocation8 + $0x21c] sm:$0xf0]  ;;  %v1997_v33 = vld [vmem:[#allocation8 + $0x1c8] sm:$0xf]  ;;  %v2310_v34 = vld [vmem:[#allocation8 + $0x1e0] sm:$0xf0] }
  0xd6   :  { %v219_v60 = vmul.f32 %v2384_v53, %v218_v56  ;;  %v1998_v37 = vor.u32 %v2310_v34, %v1997_v33  ;;  %v1999_v39 = vld [vmem:[#allocation8 + $0x1e4] sm:$0xf0]  ;;  %v2201_v33 = vld [vmem:[#allocation8 + $0x358] sm:$0xf]  ;;  %v2360_v34 = vld [vmem:[#allocation8 + $0x370] sm:$0xf0] }
  0xd8   :  { %v220_v63 = vadd.f32 %v2384_v53, %v219_v60  ;;  %1216 = vmatpush.bf16.msrb.mxu3 %v1970_v49  ;;  %1180 = vmatpush.bf16.msrb.mxu0 %v2018_v50  ;;  %v1989_v60 = vld [vmem:[#allocation8 + $0x1c0] sm:$0xf]  ;;  %v1829_v49 = vld [vmem:[#allocation8 + $0x78] sm:$0xf]  ;;  %v2268_v50 = vld [vmem:[#allocation8 + $0x90] sm:$0xf0] }
  0xd9   :  { %v1830_v52 = vor.u32 %v2268_v50, %v1829_v49 }
  0xda   :  { %v224_v2 = vsel %vm223_vm5, %v2384_v53, %v220_v63  ;;  %v2313_v53 = vld [vmem:[#allocation8 + $0x1fc] sm:$0xf]  ;;  %v1990_v63 = vor.u32 %v2309_v61, %v1989_v60  ;;  %v2082_v60 = vor.u32 %v2331_v58, %v2081_v57  ;;  %v2328_v61 = vld [vmem:[#allocation8 + $0x274] sm:$0xf] }
  0xdb   :  { %v229_v4 = vsel %vm226_vm7, %v228_v1, %v224_v2  ;;  %v2022_v56 = vor.u32 %v2313_v53, %v2019_v55  ;;  %v2306_v1 = vld [vmem:[#allocation8 + $0x1c4] sm:$0xf]  ;;  %v1991_v2 = vld [vmem:[#allocation8 + $0x1dc] sm:$0xf0]  ;;  %v2265_v53 = vld [vmem:[#allocation8 + $0x7c] sm:$0xf] }
  0xdc   :  { %v231_v5 = vpack.c.bf16 %v229_v4, %v214_v3  ;;  %v1946_v3 = vor.u32 %v2293_v62, %v1943_v0  ;;  %v1994_v4 = vor.u32 %v2306_v1, %v1991_v2  ;;  %1217 = vmatpush.bf16.msrb.mxu3 %v1942_v59  ;;  %1181 = vmatpush.bf16.msrb.mxu0 %v1990_v63  ;;  %v251_v59 = vperm.slane %v2691_v31, 1  ;;  %v2083_v62 = vld [vmem:[#allocation8 + $0x28c] sm:$0xf0]  ;;  %v1801_v1 = vld [vmem:[#allocation8 + $0x40] sm:$0xf] }
  0xdd   :  { %1208 = vmatpush.bf16.msrb.mxu2 %v2022_v56  ;;  %v2086_v0 = vor.u32 %v2328_v61, %v2083_v62  ;;  %v2261_v2 = vld [vmem:[#allocation8 + $0x58] sm:$0xf0]  ;;  %v2707_v57 = vld [vmem:[#allocation8 + $0x1b0] sm:$0xf0]  ;;  %v1979_v61 = vld [vmem:[#allocation8 + $0x1b4] sm:$0xf0] }
  0xde   :  { %342 = vmatmul.bf16.vlgmr.msra.gmra.mxu1 %v231_v5  ;;  %356 = vmatmul.bf16.vlgmr.msra.gmra.mxu2 %v231_v5  ;;  %v2193_v5 = vld [vmem:[#allocation8 + $0x350] sm:$0xf] }
  0xdf   :  { %1244 = vmatpush.bf16.msra.mxu1 %v1974_v54  ;;  %v2194_v8 = vor.u32 %v2359_v6, %v2193_v5  ;;  %v1831_v54 = vld [vmem:[#allocation8 + $0x94] sm:$0xf0]  ;;  %v1803_v5 = vld [vmem:[#allocation8 + $0x5c] sm:$0xf0] }
  0xe0   :  { %1218 = vmatpush.bf16.msrb.mxu3 %v1914_v13  ;;  %v1834_v56 = vor.u32 %v2265_v53, %v1831_v54 }
  0xe1   :  { %1209 = vmatpush.bf16.msrb.mxu2 %v1994_v4  ;;  %1230 = vmatpush.bf16.msra.mxu0 %v2194_v8  ;;  %v2258_v4 = vld [vmem:[#allocation8 + $0x44] sm:$0xf]  ;;  %v2324_v8 = vld [vmem:[#allocation8 + $0x250] sm:$0xf0] }
  0xe2   :  { %v1806_v6 = vor.u32 %v2258_v4, %v1803_v5  ;;  %v2054_v10 = vor.u32 %v2324_v8, %v2053_v7 }
  0xe3   :  { %1245 = vmatpush.bf16.msra.mxu1 %v1946_v3  ;;  %v1802_v3 = vor.u32 %v2261_v2, %v1801_v1 }
  0xe4   :  { %1219 = vmatpush.bf16.msrb.mxu3 %v1886_v25  ;;  %v2317_v25 = vld [vmem:[#allocation8 + $0x218] sm:$0xf0] }
  0xe5   :  { %1258 = vmatpush.bf16.msra.mxu2 %v2198_v12  ;;  %1231 = vmatpush.bf16.msra.mxu0 %v2166_v19  ;;  %v2055_v12 = vld [vmem:[#allocation8 + $0x254] sm:$0xf0]  ;;  %v2251_v19 = vld [vmem:[#allocation8 + $0xc] sm:$0xf] }
  0xe6   :  { %v2058_v14 = vor.u32 %v2321_v11, %v2055_v12  ;;  %v1778_v23 = vor.u32 %v2251_v19, %v1775_v20 }
  0xe7   :  { %1246 = vmatpush.bf16.msra.mxu1 %v1918_v16  ;;  %v2254_v16 = vld [vmem:[#allocation8 + $0x20] sm:$0xf0] }
  0xe8   :  { %1220 = vmatpush.bf16.msrb.mxu3 %v1858_v38  ;;  %v1774_v18 = vor.u32 %v2254_v16, %v1773_v15  ;;  %v2307_v38 = vld [vmem:[#allocation8 + $0x1cc] sm:$0xf] }
  0xe9   :  { %1259 = vmatpush.bf16.msra.mxu2 %v2170_v22  ;;  %1232 = vmatpush.bf16.msra.mxu0 %v2138_v32  ;;  %v2030_v32 = vor.u32 %v2314_v29, %v2027_v30  ;;  %v2002_v40 = vor.u32 %v2307_v38, %v1999_v39  ;;  %v2294_v29 = vld [vmem:[#allocation8 + $0x164] sm:$0xf]  ;;  %v1951_v30 = vld [vmem:[#allocation8 + $0x17c] sm:$0xf0]  ;;  %v2357_v39 = vld [vmem:[#allocation8 + $0x35c] sm:$0xf] }
  0xeb   :  { %1247 = vmatpush.bf16.msra.mxu1 %v1890_v28  ;;  %v2026_v28 = vor.u32 %v2317_v25, %v2025_v24  ;;  %v1949_v25 = vld [vmem:[#allocation8 + $0x160] sm:$0xf] }
  0xec   :  { %1221 = vmatpush.bf16.msrb.mxu3 %v1830_v52 }
  0xed   :  { %1260 = vmatpush.bf16.msra.mxu2 %v2142_v35  ;;  %1233 = vmatpush.bf16.msra.mxu0 %v2110_v45 }
  0xef   :  { %1248 = vmatpush.bf16.msra.mxu1 %v1862_v42 }
  0xf0   :  { %1222 = vmatpush.bf16.msrb.mxu3 %v1802_v3 }
  0xf1   :  { %1261 = vmatpush.bf16.msra.mxu2 %v2114_v48  ;;  %1234 = vmatpush.bf16.msra.mxu0 %v2082_v60  ;;  %v2301_v60 = vld [vmem:[#allocation8 + $0x19c] sm:$0xf] }
  0xf2   :  { %v1982_v4 = vor.u32 %v2301_v60, %v1979_v61  ;;  %v2280_v60 = vld [vmem:[#allocation8 + $0xf4] sm:$0xf]  ;;  %v1895_v61 = vld [vmem:[#allocation8 + $0x10c] sm:$0xf0] }
  0xf3   :  { %1249 = vmatpush.bf16.msra.mxu1 %v1834_v56  ;;  %v2705_v56 = vld [vmem:[#allocation8 + $0x198] sm:$0xf] }
  0xf4   :  { %1223 = vmatpush.bf16.msrb.mxu3 %v1774_v18  ;;  %v1978_v1 = vor.u32 %v2707_v57, %v2705_v56 }
  0xf5   :  { %1262 = vmatpush.bf16.msra.mxu2 %v2086_v0  ;;  %1235 = vmatpush.bf16.msra.mxu0 %v2054_v10 }
  0xf7   :  { %1250 = vmatpush.bf16.msra.mxu1 %v1806_v6  ;;  %v1865_v6 = vld [vmem:[#allocation8 + $0xb8] sm:$0xf] }
  0xf9   :  { %1263 = vmatpush.bf16.msra.mxu2 %v2058_v14  ;;  %1236 = vmatpush.bf16.msra.mxu0 %v2026_v28 }
  0xfb   :  { %1251 = vmatpush.bf16.msra.mxu1 %v1778_v23 }
  0xfd   :  { %1264 = vmatpush.bf16.msra.mxu2 %v2030_v32  ;;  %1237 = vmatpush.bf16.msra.mxu0 %v1998_v37 }
 0x101   :  { %1265 = vmatpush.bf16.msra.mxu2 %v2002_v40  ;;  %v2203_v40 = vld [vmem:[#allocation8 + $0x374] sm:$0xf0] }
 0x15b   :  { %v343_v51 = vpop.f32.mrf.mxu1 }
 0x15c   :  { %v344_v55 = vadd.f32 %v343_v51, %v250_v41 }
 0x15e   :  { %v1759_v63 = vmul.f32 -1.442695, %v344_v55 }
 0x160   :  { %2385 = vpow2.f32 %v1759_v63 }
 0x161   :  { %v357_v9 = vpop.f32.mrf.mxu2 }
 0x162   :  { %v358_v13 = vadd.f32 %v357_v9, %v251_v59  ;;  %v1867_v9 = vld [vmem:[#allocation8 + $0xd4] sm:$0xf0] }
 0x163   :  { %v345_v17 = vpop.f32.mrf.mxu1 }
 0x164   :  { %v1760_v21 = vmul.f32 -1.442695, %v358_v13  ;;  %v346_v22 = vadd.f32 %v345_v17, %v250_v41 }
 0x166   :  { %v2386_v26 = vpop.eup %2385  ;;  %2387 = vpow2.f32 %v1760_v21  ;;  %v1761_v27 = vmul.f32 -1.442695, %v346_v22 }
 0x167   :  { %v374_v31 = vadd.f32 1.0, %v2386_v26  ;;  %v2297_v26 = vld [vmem:[#allocation8 + $0x178] sm:$0xf0] }
 0x168   :  { %2389 = vpow2.f32 %v1761_v27  ;;  %v1950_v38 = vor.u32 %v2297_v26, %v1949_v25  ;;  %v2332_v25 = vld [vmem:[#allocation8 + $0x290] sm:$0xf0]  ;;  %v2329_v26 = vld [vmem:[#allocation8 + $0x27c] sm:$0xf]  ;;  %v2091_v27 = vld [vmem:[#allocation8 + $0x294] sm:$0xf0] }
 0x169   :  { %2391 = vrcp.f32 %v374_v31  ;;  %v359_v35 = vpop.f32.mrf.mxu2  ;;  %v387_v58 = vand.u32 2147483647, %v374_v31  ;;  %v389_v62 = vand.u32 2147483648, %v374_v31  ;;  %vm383_vm9 = vweird.f32 %v374_v31 }
 0x16a   :  { %v360_v36 = vadd.f32 %v359_v35, %v251_v59 }
 0x16b   :  { %vm2712_vm10 = vcmp.eq.f32.partialorder %v387_v58, 8.507059e+37  ;;  %v390_v10 = vor.u32 1.1754944e-38, %v389_v62  ;;  %v1893_v58 = vld [vmem:[#allocation8 + $0xf0] sm:$0xf] }
 0x16c   :  { %v2388_v41 = vpop.eup %2387  ;;  %v1762_v42 = vmul.f32 -1.442695, %v360_v36  ;;  %v2094_v36 = vor.u32 %v2329_v26, %v2091_v27  ;;  %v1845_v26 = vld [vmem:[#allocation8 + $0x88] sm:$0xf]  ;;  %v2270_v27 = vld [vmem:[#allocation8 + $0xa0] sm:$0xf0] }
 0x16d   :  { %v2695_v43 = vadd.f32 1.0, %v2388_v41 }
 0x16e   :  { %v2390_v44 = vpop.eup %2389  ;;  %2393 = vpow2.f32 %v1762_v42  ;;  %v1954_v42 = vor.u32 %v2294_v29, %v1951_v30 }
 0x16f   :  { %v2392_v45 = vpop.eup %2391  ;;  %2395 = vrcp.f32 %v2695_v43  ;;  %v376_v47 = vadd.f32 1.0, %v2390_v44  ;;  %vm398_vm13 = vweird.f32 %v2695_v43  ;;  %v402_v11 = vand.u32 2147483647, %v2695_v43 }
 0x170   :  { %v379_v46 = vmul.f32 %v2392_v45, %v374_v31  ;;  %vm384_vm8 = vweird.f32 %v2392_v45  ;;  %v404_v14 = vand.u32 2147483648, %v2695_v43 }
 0x171   :  { %2397 = vrcp.f32 %v376_v47  ;;  %v419_v3 = vand.u32 2147483648, %v376_v47  ;;  %v417_v8 = vand.u32 2147483647, %v376_v47  ;;  %vm2716_vm12 = vmor %vm383_vm9, %vm384_vm8  ;;  %vm413_vm14 = vweird.f32 %v376_v47 }
 0x172   :  { %v380_v48 = vsub.f32 1.0, %v379_v46  ;;  %v405_v35 = vor.u32 1.1754944e-38, %v404_v14  ;;  %vm403_vm6 = vcmp.eq.f32.partialorder %v402_v11, 8.507059e+37  ;;  %v2290_v46 = vld [vmem:[#allocation8 + $0x140] sm:$0xf0] }
 0x173   :  { %v420_v17 = vor.u32 1.1754944e-38, %v419_v3  ;;  %vm418_vm1 = vcmp.eq.f32.partialorder %v417_v8, 8.507059e+37  ;;  %v2147_v3 = vld [vmem:[#allocation8 + $0x304] sm:$0xf0]  ;;  %v2273_v8 = vld [vmem:[#allocation8 + $0xbc] sm:$0xf] }
 0x174   :  { %v2394_v49 = vpop.eup %2393  ;;  %v381_v53 = vmul.f32 %v2392_v45, %v380_v48  ;;  %v1923_v48 = vld [vmem:[#allocation8 + $0x144] sm:$0xf0]  ;;  %v2336_v14 = vld [vmem:[#allocation8 + $0x2b4] sm:$0xf] }
 0x175   :  { %v2698_v50 = vpop.eup %2395  ;;  %v2700_v51 = vadd.f32 1.0, %v2394_v49 }
 0x176   :  { %v394_v52 = vmul.f32 %v2698_v50, %v2695_v43  ;;  %v382_v63 = vadd.f32 %v2392_v45, %v381_v53  ;;  %vm399_vm15 = vweird.f32 %v2698_v50  ;;  %v1921_v43 = vld [vmem:[#allocation8 + $0x128] sm:$0xf]  ;;  %v2353_v53 = vld [vmem:[#allocation8 + $0x338] sm:$0xf0] }
 0x177   :  { %2399 = vrcp.f32 %v2700_v51  ;;  %v2398_v54 = vpop.eup %2397  ;;  %v432_v20 = vand.u32 2147483647, %v2700_v51  ;;  %v434_v21 = vand.u32 2147483648, %v2700_v51  ;;  %vm2734_vm3 = vmor %vm398_vm13, %vm399_vm15  ;;  %vm428_vm4 = vweird.f32 %v2700_v51 }
 0x178   :  { %v395_v55 = vsub.f32 1.0, %v394_v52  ;;  %v409_v59 = vmul.f32 %v2398_v54, %v376_v47  ;;  %vm414_vm11 = vweird.f32 %v2398_v54  ;;  %v386_v13 = vsel %vm2716_vm12, %v2392_v45, %v382_v63  ;;  %v2287_v47 = vld [vmem:[#allocation8 + $0x12c] sm:$0xf]  ;;  %v2173_v52 = vld [vmem:[#allocation8 + $0x320] sm:$0xf] }
 0x179   :  { %vm415_vm0 = vmor %vm413_vm14, %vm414_vm11  ;;  %v391_v22 = vsel %vm2712_vm10, %v390_v10, %v386_v13  ;;  %v435_v37 = vor.u32 1.1754944e-38, %v434_v21  ;;  %vm433_vm7 = vcmp.eq.f32.partialorder %v432_v20, 8.507059e+37  ;;  %v1922_v56 = vor.u32 %v2290_v46, %v1921_v43  ;;  %v2339_v13 = vld [vmem:[#allocation8 + $0x2c8] sm:$0xf0]  ;;  %v2266_v20 = vld [vmem:[#allocation8 + $0x84] sm:$0xf] }
 0x17a   :  { %v410_v0 = vsub.f32 1.0, %v409_v59  ;;  %v396_v2 = vmul.f32 %v2698_v50, %v395_v55  ;;  %v2175_v55 = vld [vmem:[#allocation8 + $0x33c] sm:$0xf0]  ;;  %v1926_v57 = vor.u32 %v2287_v47, %v1923_v48  ;;  %v2283_v59 = vld [vmem:[#allocation8 + $0x108] sm:$0xf0]  ;;  %v2174_v62 = vor.u32 %v2353_v53, %v2173_v52 }
 0x17b   :  { %v1839_v21 = vld [vmem:[#allocation8 + $0x9c] sm:$0xf0]  ;;  %v1781_v43 = vld [vmem:[#allocation8 + $0x10] sm:$0xf]  ;;  %v2033_v52 = vld [vmem:[#allocation8 + $0x208] sm:$0xf] }
 0x17c   :  { %v411_v7 = vmul.f32 %v2398_v54, %v410_v0  ;;  %v397_v16 = vadd.f32 %v2698_v50, %v396_v2  ;;  %v2145_v0 = vld [vmem:[#allocation8 + $0x2e8] sm:$0xf]  ;;  %v2343_v2 = vld [vmem:[#allocation8 + $0x2ec] sm:$0xf]  ;;  %v1842_v30 = vor.u32 %v2266_v20, %v1839_v21  ;;  %v1783_v46 = vld [vmem:[#allocation8 + $0x2c] sm:$0xf0] }
 0x17d   :  { %v2400_v5 = vpop.eup %2399  ;;  %v2150_v11 = vor.u32 %v2343_v2, %v2147_v3  ;;  %v2318_v53 = vld [vmem:[#allocation8 + $0x220] sm:$0xf0]  ;;  %v2007_v2 = vld [vmem:[#allocation8 + $0x1ec] sm:$0xf0]  ;;  %v2209_v3 = vld [vmem:[#allocation8 + $0x360] sm:$0xf] }
 0x17e   :  { %v424_v12 = vmul.f32 %v2400_v5, %v2700_v51  ;;  %v412_v15 = vadd.f32 %v2398_v54, %v411_v7  ;;  %vm429_vm2 = vweird.f32 %v2400_v5  ;;  %v401_v31 = vsel %vm2734_vm3, %v2698_v50, %v397_v16  ;;  %v2276_v7 = vld [vmem:[#allocation8 + $0xd0] sm:$0xf0]  ;;  %v1873_v20 = vld [vmem:[#allocation8 + $0xc0] sm:$0xf]  ;;  %v2277_v21 = vld [vmem:[#allocation8 + $0xd8] sm:$0xf0] }
 0x17f   :  { %vm2744_vm5 = vmor %vm428_vm4, %vm429_vm2  ;;  %v406_v44 = vsel %vm403_vm6, %v405_v35, %v401_v31  ;;  %v2202_v50 = vor.u32 %v2360_v34, %v2201_v33  ;;  %v2206_v51 = vor.u32 %v2357_v39, %v2203_v40  ;;  %v1866_v16 = vor.u32 %v2276_v7, %v1865_v6  ;;  %v1809_v31 = vld [vmem:[#allocation8 + $0x48] sm:$0xf]  ;;  %v2259_v33 = vld [vmem:[#allocation8 + $0x4c] sm:$0xf] }
 0x180   :  { %v425_v18 = vsub.f32 1.0, %v424_v12  ;;  %v416_v19 = vsel %vm415_vm0, %v2398_v54, %v412_v15  ;;  %v2350_v54 = vld [vmem:[#allocation8 + $0x324] sm:$0xf]  ;;  %v2117_v12 = vld [vmem:[#allocation8 + $0x2b0] sm:$0xf] }
 0x181   :  { %v421_v23 = vsel %vm418_vm1, %v420_v17, %v416_v19  ;;  %v2178_v63 = vor.u32 %v2350_v54, %v2175_v55  ;;  %v2119_v15 = vld [vmem:[#allocation8 + $0x2cc] sm:$0xf0]  ;;  %v1870_v17 = vor.u32 %v2273_v8, %v1867_v9  ;;  %v2269_v19 = vld [vmem:[#allocation8 + $0x98] sm:$0xf0]  ;;  %v1811_v34 = vld [vmem:[#allocation8 + $0x64] sm:$0xf0] }
 0x182   :  { %v426_v24 = vmul.f32 %v2400_v5, %v425_v18  ;;  %v2738_v28 = vpack.c.bf16 %v421_v23, %v391_v22  ;;  %v1837_v18 = vld [vmem:[#allocation8 + $0x80] sm:$0xf]  ;;  %v2118_v22 = vor.u32 %v2339_v13, %v2117_v12  ;;  %v2122_v23 = vor.u32 %v2336_v14, %v2119_v15  ;;  %v2322_v39 = vld [vmem:[#allocation8 + $0x244] sm:$0xf]  ;;  %v2315_v54 = vld [vmem:[#allocation8 + $0x20c] sm:$0xf] }
 0x183   :  { %v1838_v29 = vor.u32 %v2269_v19, %v1837_v18  ;;  %v2063_v40 = vld [vmem:[#allocation8 + $0x25c] sm:$0xf0]  ;;  %v2035_v55 = vld [vmem:[#allocation8 + $0x224] sm:$0xf0]  ;;  %v1929_v8 = vld [vmem:[#allocation8 + $0x130] sm:$0xf] }
 0x184   :  { %v427_v32 = vadd.f32 %v2400_v5, %v426_v24  ;;  %1168 = vmatmul.bf16.vlgmr.msra.gmra.mxu3 %v2738_v28  ;;  %1196 = vmatmul.bf16.vlgmr.msrb.gmra.mxu1 %v2738_v28  ;;  %v2089_v24 = vld [vmem:[#allocation8 + $0x278] sm:$0xf]  ;;  %v2066_v48 = vor.u32 %v2322_v39, %v2063_v40  ;;  %v2291_v9 = vld [vmem:[#allocation8 + $0x148] sm:$0xf0]  ;;  %v2354_v12 = vld [vmem:[#allocation8 + $0x340] sm:$0xf0] }
 0x185   :  { %1272 = vmatpush.bf16.msra.mxu3 %v1978_v1  ;;  %1300 = vmatpush.bf16.msrb.mxu1 %v1982_v4  ;;  %v2346_v1 = vld [vmem:[#allocation8 + $0x300] sm:$0xf0]  ;;  %v1894_v4 = vor.u32 %v2283_v59, %v1893_v58  ;;  %v2090_v35 = vor.u32 %v2332_v25, %v2089_v24  ;;  %v2034_v59 = vor.u32 %v2318_v53, %v2033_v52  ;;  %v1901_v14 = vld [vmem:[#allocation8 + $0xf8] sm:$0xf]  ;;  %v2284_v15 = vld [vmem:[#allocation8 + $0x110] sm:$0xf0] }
 0x186   :  { %v431_v41 = vsel %vm2744_vm5, %v2400_v5, %v427_v32  ;;  %v1898_v5 = vor.u32 %v2280_v60, %v1895_v61  ;;  %v2146_v10 = vor.u32 %v2346_v1, %v2145_v0  ;;  %v2262_v32 = vld [vmem:[#allocation8 + $0x60] sm:$0xf0]  ;;  %v2038_v60 = vor.u32 %v2315_v54, %v2035_v55  ;;  %v1957_v61 = vld [vmem:[#allocation8 + $0x168] sm:$0xf]  ;;  %v2311_v0 = vld [vmem:[#allocation8 + $0x1e8] sm:$0xf0] }
 0x187   :  { %v436_v45 = vsel %vm433_vm7, %v435_v37, %v431_v41  ;;  %v2061_v37 = vld [vmem:[#allocation8 + $0x240] sm:$0xf]  ;;  %v1810_v41 = vor.u32 %v2262_v32, %v1809_v31  ;;  %v2308_v1 = vld [vmem:[#allocation8 + $0x1d4] sm:$0xf]  ;;  %v1930_v13 = vor.u32 %v2291_v9, %v1929_v8  ;;  %v2347_v18 = vld [vmem:[#allocation8 + $0x308] sm:$0xf0]  ;;  %v1902_v19 = vor.u32 %v2284_v15, %v1901_v14 }
 0x188   :  { %v2752_v49 = vpack.c.bf16 %v436_v45, %v406_v44  ;;  %v2255_v44 = vld [vmem:[#allocation8 + $0x28] sm:$0xf0]  ;;  %v2252_v45 = vld [vmem:[#allocation8 + $0x14] sm:$0xf]  ;;  %v2010_v7 = vor.u32 %v2308_v1, %v2007_v2  ;;  %v1874_v25 = vor.u32 %v2277_v21, %v1873_v20  ;;  %v2333_v31 = vld [vmem:[#allocation8 + $0x298] sm:$0xf0]  ;;  %v1846_v32 = vor.u32 %v2270_v27, %v1845_v26 }
 0x189   :  { %1273 = vmatpush.bf16.msra.mxu3 %v1950_v38  ;;  %1301 = vmatpush.bf16.msrb.mxu1 %v1954_v42  ;;  %v2325_v38 = vld [vmem:[#allocation8 + $0x258] sm:$0xf0]  ;;  %v1814_v42 = vor.u32 %v2259_v33, %v1811_v34  ;;  %v2340_v24 = vld [vmem:[#allocation8 + $0x2d0] sm:$0xf0]  ;;  %v1817_v33 = vld [vmem:[#allocation8 + $0x50] sm:$0xf] }
 0x18a   :  { %1182 = vmatmul.bf16.vlgmr.msrb.gmra.mxu0 %v2752_v49  ;;  %1210 = vmatmul.bf16.vlgmr.msrb.gmra.mxu2 %v2752_v49  ;;  %v2062_v47 = vor.u32 %v2325_v38, %v2061_v37  ;;  %v2263_v34 = vld [vmem:[#allocation8 + $0x68] sm:$0xf0]  ;;  %v2326_v37 = vld [vmem:[#allocation8 + $0x260] sm:$0xf0]  ;;  %v1789_v39 = vld [vmem:[#allocation8 + $0x18] sm:$0xf] }
 0x18b   :  { %1286 = vmatpush.bf16.msrb.mxu0 %v2202_v50  ;;  %1314 = vmatpush.bf16.msrb.mxu2 %v2206_v51  ;;  %v1985_v50 = vld [vmem:[#allocation8 + $0x1a0] sm:$0xf]  ;;  %v2305_v51 = vld [vmem:[#allocation8 + $0x1b8] sm:$0xf0]  ;;  %v1818_v38 = vor.u32 %v2263_v34, %v1817_v33  ;;  %v2256_v40 = vld [vmem:[#allocation8 + $0x30] sm:$0xf0] }
 0x18c   :  { %v1986_v58 = vor.u32 %v2305_v51, %v1985_v50  ;;  %v2766_v51 = vld [vmem:[#allocation10] sm:$0xff] }
 0x18d   :  { %1274 = vmatpush.bf16.msra.mxu3 %v1922_v56  ;;  %1302 = vmatpush.bf16.msrb.mxu1 %v1926_v57  ;;  %v1782_v56 = vor.u32 %v2255_v44, %v1781_v43  ;;  %v1786_v57 = vor.u32 %v2252_v45, %v1783_v46  ;;  %v2319_v43 = vld [vmem:[#allocation8 + $0x228] sm:$0xf0]  ;;  %v1790_v44 = vor.u32 %v2256_v40, %v1789_v39  ;;  %v2013_v46 = vld [vmem:[#allocation8 + $0x1d8] sm:$0xf]  ;;  %v570_v52 = vperm.slane %v2766_v51, 0 }
 0x18e   :  { %v571_v55 = vperm.slane %v2766_v51, 1  ;;  %v574_v33 = vperm.slane %v2766_v51, 4 }
 0x18f   :  { %1287 = vmatpush.bf16.msrb.mxu0 %v2174_v62  ;;  %1315 = vmatpush.bf16.msrb.mxu2 %v2178_v63  ;;  %v2298_v62 = vld [vmem:[#allocation8 + $0x180] sm:$0xf0]  ;;  %v2005_v63 = vld [vmem:[#allocation8 + $0x1d0] sm:$0xf] }
 0x190   :  { %v2006_v6 = vor.u32 %v2311_v0, %v2005_v63 }
 0x191   :  { %1275 = vmatpush.bf16.msra.mxu3 %v1894_v4  ;;  %1303 = vmatpush.bf16.msrb.mxu1 %v1898_v5  ;;  %v2361_v4 = vld [vmem:[#allocation8 + $0x378] sm:$0xf0]  ;;  %v1958_v5 = vor.u32 %v2298_v62, %v1957_v61 }
 0x193   :  { %1288 = vmatpush.bf16.msrb.mxu0 %v2146_v10  ;;  %1316 = vmatpush.bf16.msrb.mxu2 %v2150_v11  ;;  %v2210_v10 = vor.u32 %v2361_v4, %v2209_v3  ;;  %v2181_v11 = vld [vmem:[#allocation8 + $0x328] sm:$0xf] }
 0x194   :  { %1224 = vmatmul.bf16.vlgmr.msrb.gmra.mxu3 %v2738_v28  ;;  %1252 = vmatmul.bf16.vlgmr.msra.gmra.mxu1 %v2738_v28 }
 0x195   :  { %1276 = vmatpush.bf16.msra.mxu3 %v1866_v16  ;;  %1304 = vmatpush.bf16.msrb.mxu1 %v1870_v17  ;;  %v2182_v16 = vor.u32 %v2354_v12, %v2181_v11  ;;  %v2153_v17 = vld [vmem:[#allocation8 + $0x2f0] sm:$0xf] }
 0x197   :  { %1289 = vmatpush.bf16.msrb.mxu0 %v2118_v22  ;;  %1317 = vmatpush.bf16.msrb.mxu2 %v2122_v23  ;;  %v2154_v22 = vor.u32 %v2347_v18, %v2153_v17  ;;  %v2125_v23 = vld [vmem:[#allocation8 + $0x2b8] sm:$0xf] }
 0x199   :  { %1277 = vmatpush.bf16.msra.mxu3 %v1838_v29  ;;  %1305 = vmatpush.bf16.msrb.mxu1 %v1842_v30  ;;  %v2126_v29 = vor.u32 %v2340_v24, %v2125_v23  ;;  %v2097_v30 = vld [vmem:[#allocation8 + $0x280] sm:$0xf] }
 0x19a   :  { %1238 = vmatmul.bf16.vlgmr.msra.gmra.mxu0 %v2752_v49  ;;  %1266 = vmatmul.bf16.vlgmr.msra.gmra.mxu2 %v2752_v49 }
 0x19b   :  { %1290 = vmatpush.bf16.msrb.mxu0 %v2090_v35  ;;  %1318 = vmatpush.bf16.msrb.mxu2 %v2094_v36  ;;  %v2098_v35 = vor.u32 %v2333_v31, %v2097_v30  ;;  %v2069_v36 = vld [vmem:[#allocation8 + $0x248] sm:$0xf] }
 0x19d   :  { %1278 = vmatpush.bf16.msra.mxu3 %v1810_v41  ;;  %1306 = vmatpush.bf16.msrb.mxu1 %v1814_v42  ;;  %v2070_v41 = vor.u32 %v2326_v37, %v2069_v36  ;;  %v2041_v42 = vld [vmem:[#allocation8 + $0x210] sm:$0xf] }
 0x19e   :  { %v2042_v45 = vor.u32 %v2319_v43, %v2041_v42 }
 0x19f   :  { %1291 = vmatpush.bf16.msrb.mxu0 %v2062_v47  ;;  %1319 = vmatpush.bf16.msrb.mxu2 %v2066_v48  ;;  %v2312_v47 = vld [vmem:[#allocation8 + $0x1f0] sm:$0xf0] }
 0x1a0   :  { %v2014_v48 = vor.u32 %v2312_v47, %v2013_v46 }
 0x1a1   :  { %1279 = vmatpush.bf16.msra.mxu3 %v1782_v56  ;;  %1307 = vmatpush.bf16.msrb.mxu1 %v1786_v57 }
 0x1a3   :  { %1292 = vmatpush.bf16.msrb.mxu0 %v2034_v59  ;;  %1320 = vmatpush.bf16.msrb.mxu2 %v2038_v60 }
 0x1a4   :  { %1280 = vmatmul.bf16.vlgmr.msra.gmra.mxu3 %v2738_v28  ;;  %1308 = vmatmul.bf16.vlgmr.msrb.gmra.mxu1 %v2738_v28 }
 0x1a5   :  { %1328 = vmatpush.bf16.msrb.mxu3 %v1986_v58 }
 0x1a7   :  { %1293 = vmatpush.bf16.msrb.mxu0 %v2006_v6  ;;  %1321 = vmatpush.bf16.msrb.mxu2 %v2010_v7  ;;  %v572_v6 = vperm.slane %v2766_v51, 2 }
 0x1a9   :  { %1329 = vmatpush.bf16.msrb.mxu3 %v1958_v5 }
 0x1aa   :  { %1294 = vmatmul.bf16.vlgmr.msrb.gmra.mxu0 %v2752_v49  ;;  %1322 = vmatmul.bf16.vlgmr.msrb.gmra.mxu2 %v2752_v49 }
 0x1ab   :  { %1342 = vmatpush.bf16.msra.mxu0 %v2210_v10 }
 0x1ad   :  { %1330 = vmatpush.bf16.msrb.mxu3 %v1930_v13  ;;  %v573_v13 = vperm.slane %v2766_v51, 3 }
 0x1af   :  { %1343 = vmatpush.bf16.msra.mxu0 %v2182_v16 }
 0x1b1   :  { %1331 = vmatpush.bf16.msrb.mxu3 %v1902_v19 }
 0x1b3   :  { %1344 = vmatpush.bf16.msra.mxu0 %v2154_v22 }
 0x1b5   :  { %1332 = vmatpush.bf16.msrb.mxu3 %v1874_v25 }
 0x1b7   :  { %1345 = vmatpush.bf16.msra.mxu0 %v2126_v29 }
 0x1b9   :  { %1333 = vmatpush.bf16.msrb.mxu3 %v1846_v32  ;;  %v575_v32 = vperm.slane %v2766_v51, 5 }
 0x1bb   :  { %1346 = vmatpush.bf16.msra.mxu0 %v2098_v35 }
 0x1bd   :  { %1334 = vmatpush.bf16.msrb.mxu3 %v1818_v38 }
 0x1bf   :  { %1347 = vmatpush.bf16.msra.mxu0 %v2070_v41 }
 0x1c1   :  { %1335 = vmatpush.bf16.msrb.mxu3 %v1790_v44 }
 0x1c3   :  { %1348 = vmatpush.bf16.msra.mxu0 %v2042_v45 }
 0x1c4   :  { %1336 = vmatmul.bf16.vlgmr.msrb.gmra.mxu3 %v2738_v28 }
 0x1c7   :  { %1349 = vmatpush.bf16.msra.mxu0 %v2014_v48 }
 0x1ca   :  { %1350 = vmatmul.bf16.vlgmr.msra.gmra.mxu0 %v2752_v49 }
 0x201   :  { %v1197_v50 = vpop.f32.mrf.mxu1 }
 0x202   :  { %v1198_v59 = vadd.f32 %v1197_v50, %v571_v55 }
 0x207   :  { %v1169_v53 = vpop.f32.mrf.mxu3  ;;  %v1183_v54 = vpop.f32.mrf.mxu0 }
 0x208   :  { %v1170_v56 = vadd.f32 %v1169_v53, %v570_v52 }
 0x209   :  { %v1199_v58 = vpop.f32.mrf.mxu1 }
 0x20a   :  { %v1184_v57 = vadd.f32 %v1183_v54, %v1170_v56  ;;  %v1200_v3 = vadd.f32 %v1199_v58, %v571_v55 }
 0x20c   :  { %v2211_v60 = vmul.f32 -1.442695, %v1184_v57 }
 0x20d   :  { %v1211_v61 = vpop.f32.mrf.mxu2 }
 0x20e   :  { %2401 = vpow2.f32 %v2211_v60  ;;  %v1212_v28 = vadd.f32 %v1211_v61, %v1198_v59 }
 0x20f   :  { %v1171_v62 = vpop.f32.mrf.mxu3  ;;  %v1185_v63 = vpop.f32.mrf.mxu0 }
 0x210   :  { %v2212_v49 = vmul.f32 -1.442695, %v1212_v28  ;;  %v1172_v0 = vadd.f32 %v1171_v62, %v570_v52 }
 0x211   :  { %v1253_v5 = vpop.f32.mrf.mxu1 }
 0x212   :  { %2403 = vpow2.f32 %v2212_v49  ;;  %v1186_v1 = vadd.f32 %v1185_v63, %v1172_v0  ;;  %v1254_v20 = vadd.f32 %v1253_v5, %v573_v13 }
 0x214   :  { %v2402_v2 = vpop.eup %2401  ;;  %v2218_v4 = vmul.f32 -1.442695, %v1186_v1 }
 0x215   :  { %v1398_v7 = vadd.f32 1.0, %v2402_v2  ;;  %v1213_v8 = vpop.f32.mrf.mxu2 }
 0x216   :  { %2405 = vpow2.f32 %v2218_v4  ;;  %v1214_v9 = vadd.f32 %v1213_v8, %v1200_v3 }
 0x217   :  { %2407 = vrcp.f32 %v1398_v7  ;;  %v1225_v10 = vpop.f32.mrf.mxu3  ;;  %v1239_v11 = vpop.f32.mrf.mxu0  ;;  %v1421_v19 = vand.u32 2147483647, %v1398_v7  ;;  %v1423_v29 = vand.u32 2147483648, %v1398_v7  ;;  %vm1417_vm8 = vweird.f32 %v1398_v7 }
 0x218   :  { %v2404_v12 = vpop.eup %2403  ;;  %v2219_v14 = vmul.f32 -1.442695, %v1214_v9  ;;  %v1226_v15 = vadd.f32 %v1225_v10, %v572_v6 }
 0x219   :  { %v2772_v16 = vadd.f32 1.0, %v2404_v12  ;;  %v1255_v26 = vpop.f32.mrf.mxu1  ;;  %vm2780_vm9 = vcmp.eq.f32.partialorder %v1421_v19, 8.507059e+37  ;;  %v1424_v45 = vor.u32 1.1754944e-38, %v1423_v29 }
 0x21a   :  { %2409 = vpow2.f32 %v2219_v14  ;;  %v1240_v17 = vadd.f32 %v1239_v11, %v1226_v15  ;;  %v1256_v47 = vadd.f32 %v1255_v26, %v573_v13 }
 0x21b   :  { %2411 = vrcp.f32 %v2772_v16  ;;  %v1436_v39 = vand.u32 2147483647, %v2772_v16  ;;  %v1438_v40 = vand.u32 2147483648, %v2772_v16  ;;  %vm1432_vm11 = vweird.f32 %v2772_v16 }
 0x21c   :  { %v2406_v18 = vpop.eup %2405  ;;  %v2213_v21 = vmul.f32 -1.442695, %v1240_v17 }
 0x21d   :  { %v2408_v22 = vpop.eup %2407  ;;  %v2775_v23 = vadd.f32 1.0, %v2406_v18  ;;  %v1267_v24 = vpop.f32.mrf.mxu2  ;;  %vm2794_vm13 = vcmp.eq.f32.partialorder %v1436_v39, 8.507059e+37  ;;  %v1439_v56 = vor.u32 1.1754944e-38, %v1438_v40 }
 0x21e   :  { %v1413_v25 = vmul.f32 %v2408_v22, %v1398_v7  ;;  %2413 = vpow2.f32 %v2213_v21  ;;  %v1268_v27 = vadd.f32 %v1267_v24, %v1254_v20  ;;  %vm1418_vm10 = vweird.f32 %v2408_v22 }
 0x21f   :  { %2415 = vrcp.f32 %v2775_v23  ;;  %v1227_v30 = vpop.f32.mrf.mxu3  ;;  %v1241_v31 = vpop.f32.mrf.mxu0  ;;  %v1526_v46 = vand.u32 2147483647, %v2775_v23  ;;  %v1528_v53 = vand.u32 2147483648, %v2775_v23  ;;  %vm1419_vm12 = vmor %vm1417_vm8, %vm1418_vm10  ;;  %vm1522_vm15 = vweird.f32 %v2775_v23 }
 0x220   :  { %v2410_v34 = vpop.eup %2409  ;;  %v1414_v35 = vsub.f32 1.0, %v1413_v25  ;;  %v2214_v37 = vmul.f32 -1.442695, %v1268_v27  ;;  %v1228_v42 = vadd.f32 %v1227_v30, %v572_v6 }
 0x221   :  { %v2412_v38 = vpop.eup %2411  ;;  %v2786_v41 = vadd.f32 1.0, %v2410_v34  ;;  %vm2804_vm0 = vcmp.eq.f32.partialorder %v1526_v46, 8.507059e+37  ;;  %v1529_v3 = vor.u32 1.1754944e-38, %v1528_v53  ;;  %v1309_v4 = vpop.f32.mrf.mxu1 }
 0x222   :  { %v1415_v43 = vmul.f32 %v2408_v22, %v1414_v35  ;;  %v1428_v44 = vmul.f32 %v2412_v38, %v2772_v16  ;;  %2417 = vpow2.f32 %v2214_v37  ;;  %v1242_v58 = vadd.f32 %v1241_v31, %v1228_v42 }
 0x223   :  { %2419 = vrcp.f32 %v2786_v41  ;;  %vm1433_vm14 = vweird.f32 %v2412_v38  ;;  %vm1537_vm1 = vweird.f32 %v2786_v41  ;;  %v1541_v15 = vand.u32 2147483647, %v2786_v41 }
 0x224   :  { %v2414_v48 = vpop.eup %2413  ;;  %v1416_v50 = vadd.f32 %v2408_v22, %v1415_v43  ;;  %v1429_v52 = vsub.f32 1.0, %v1428_v44  ;;  %vm1434_vm2 = vmor %vm1432_vm11, %vm1433_vm14  ;;  %v2220_v8 = vmul.f32 -1.442695, %v1242_v58  ;;  %v1543_v16 = vand.u32 2147483648, %v2786_v41 }
 0x225   :  { %v2416_v54 = vpop.eup %2415  ;;  %v2798_v57 = vadd.f32 1.0, %v2414_v48  ;;  %v1269_v59 = vpop.f32.mrf.mxu2  ;;  %v1310_v20 = vadd.f32 %v1309_v4, %v575_v32  ;;  %vm2832_vm6 = vcmp.eq.f32.partialorder %v1541_v15, 8.507059e+37 }
 0x226   :  { %v1420_v60 = vsel %vm1419_vm12, %v2408_v22, %v1416_v50  ;;  %v1430_v61 = vmul.f32 %v2412_v38, %v1429_v52  ;;  %v1518_v28 = vmul.f32 %v2416_v54, %v2775_v23  ;;  %v1270_v9 = vadd.f32 %v1269_v59, %v1256_v47 }
 0x227   :  { %v1425_v62 = vsel %vm2780_vm9, %v1424_v45, %v1420_v60  ;;  %2421 = vrcp.f32 %v2798_v57  ;;  %v1281_v49 = vpop.f32.mrf.mxu3  ;;  %v1295_v5 = vpop.f32.mrf.mxu0  ;;  %vm1523_vm3 = vweird.f32 %v2416_v54  ;;  %v1451_v19 = vand.u32 2147483647, %v2798_v57 }
 0x228   :  { %v2418_v0 = vpop.eup %2417  ;;  %1622 = vst [vmem:[#allocation11] sm:$0xff] %v1425_v62  ;;  %v1431_v1 = vadd.f32 %v2412_v38, %v1430_v61  ;;  %v1519_v2 = vsub.f32 1.0, %v1518_v28  ;;  %v1282_v10 = vadd.f32 %v1281_v49, %v574_v33  ;;  %vm1524_vm4 = vmor %vm1522_vm15, %vm1523_vm3  ;;  %v1453_v22 = vand.u32 2147483648, %v2798_v57 }
 0x229   :  { %v2420_v6 = vpop.eup %2419  ;;  %v2813_v7 = vadd.f32 1.0, %v2418_v0  ;;  %v2221_v24 = vmul.f32 -1.442695, %v1270_v9  ;;  %v1544_v23 = vor.u32 1.1754944e-38, %v1543_v16  ;;  %vm1447_vm8 = vweird.f32 %v2798_v57  ;;  %v1311_v48 = vpop.f32.mrf.mxu1 }
 0x22a   :  { %v1435_v11 = vsel %vm1434_vm2, %v2412_v38, %v1431_v1  ;;  %v1520_v12 = vmul.f32 %v2416_v54, %v1519_v2  ;;  %v1533_v13 = vmul.f32 %v2420_v6, %v2786_v41  ;;  %v1296_v25 = vadd.f32 %v1295_v5, %v1282_v10 }
 0x22b   :  { %v1440_v14 = vsel %vm2794_vm13, %v1439_v56, %v1435_v11  ;;  %2423 = vrcp.f32 %v2813_v7  ;;  %vm1538_vm5 = vweird.f32 %v2420_v6  ;;  %vm2839_vm9 = vcmp.eq.f32.partialorder %v1451_v19, 8.507059e+37 }
 0x22c   :  { %1623 = vst [vmem:[#allocation11 + $0x8] sm:$0xff] %v1440_v14  ;;  %v1521_v17 = vadd.f32 %v2416_v54, %v1520_v12  ;;  %v1534_v18 = vsub.f32 1.0, %v1533_v13  ;;  %2425 = vpow2.f32 %v2220_v8  ;;  %v2215_v38 = vmul.f32 -1.442695, %v1296_v25  ;;  %vm1539_vm7 = vmor %vm1537_vm1, %vm1538_vm5 }
 0x22d   :  { %v2422_v21 = vpop.eup %2421  ;;  %v1323_v30 = vpop.f32.mrf.mxu2  ;;  %2427 = vpow2.f32 %v2221_v24  ;;  %v1454_v43 = vor.u32 1.1754944e-38, %v1453_v22  ;;  %v1466_v58 = vand.u32 2147483647, %v2813_v7  ;;  %v1468_v60 = vand.u32 2147483648, %v2813_v7 }
 0x22e   :  { %v1525_v26 = vsel %vm1524_vm4, %v2416_v54, %v1521_v17  ;;  %v1535_v27 = vmul.f32 %v2420_v6, %v1534_v18  ;;  %v1443_v29 = vmul.f32 %v2422_v21, %v2798_v57  ;;  %v1324_v39 = vadd.f32 %v1323_v30, %v1310_v20 }
 0x22f   :  { %v1530_v31 = vsel %vm2804_vm0, %v1529_v3, %v1525_v26  ;;  %v1283_v35 = vpop.f32.mrf.mxu3  ;;  %vm1448_vm10 = vweird.f32 %v2422_v21  ;;  %v1297_v50 = vpop.f32.mrf.mxu0  ;;  %2429 = vpow2.f32 %v2215_v38  ;;  %v1312_v61 = vadd.f32 %v1311_v48, %v575_v32 }
 0x230   :  { %1629 = vst [vmem:[#allocation11 + $0x38] sm:$0xff] %v1530_v31  ;;  %v1536_v36 = vadd.f32 %v2420_v6, %v1535_v27  ;;  %v1444_v37 = vsub.f32 1.0, %v1443_v29  ;;  %v1284_v44 = vadd.f32 %v1283_v35, %v574_v33  ;;  %v2216_v53 = vmul.f32 -1.442695, %v1324_v39  ;;  %vm1449_vm11 = vmor %vm1447_vm8, %vm1448_vm10 }
 0x231   :  { %v2424_v40 = vpop.eup %2423  ;;  %vm1462_vm13 = vweird.f32 %v2813_v7  ;;  %v1469_v32 = vor.u32 1.1754944e-38, %v1468_v60  ;;  %vm1467_vm15 = vcmp.eq.f32.partialorder %v1466_v58, 8.507059e+37  ;;  %v576_v20 = vperm.slane %v2766_v51, 6 }
 0x232   :  { %v1540_v45 = vsel %vm1539_vm7, %v2420_v6, %v1536_v36  ;;  %v1445_v46 = vmul.f32 %v2422_v21, %v1444_v37  ;;  %v1458_v47 = vmul.f32 %v2424_v40, %v2813_v7  ;;  %v2426_v52 = vpop.eup %2425  ;;  %v1298_v54 = vadd.f32 %v1297_v50, %v1284_v44 }
 0x233   :  { %v1545_v41 = vsel %vm2832_vm6, %v1544_v23, %v1540_v45  ;;  %v1407_v33 = vadd.f32 1.0, %v2426_v52  ;;  %v2428_v59 = vpop.eup %2427  ;;  %2431 = vpow2.f32 %v2216_v53  ;;  %vm1463_vm12 = vweird.f32 %v2424_v40 }
 0x234   :  { %1630 = vst [vmem:[#allocation11 + $0x40] sm:$0xff] %v1545_v41  ;;  %v1446_v55 = vadd.f32 %v2422_v21, %v1445_v46  ;;  %v1459_v56 = vsub.f32 1.0, %v1458_v47  ;;  %v2222_v28 = vmul.f32 -1.442695, %v1298_v54  ;;  %v2857_v1 = vadd.f32 1.0, %v2428_v59  ;;  %vm1464_vm14 = vmor %vm1462_vm13, %vm1463_vm12 }
 0x235   :  { %2433 = vrcp.f32 %v1407_v33  ;;  %v1325_v49 = vpop.f32.mrf.mxu2  ;;  %v2430_v3 = vpop.eup %2429  ;;  %v1556_v12 = vand.u32 2147483647, %v1407_v33  ;;  %v1558_v13 = vand.u32 2147483648, %v1407_v33  ;;  %vm1552_vm1 = vweird.f32 %v1407_v33 }
 0x236   :  { %v1450_v62 = vsel %vm1449_vm11, %v2422_v21, %v1446_v55  ;;  %v1460_v63 = vmul.f32 %v2424_v40, %v1459_v56  ;;  %2435 = vpow2.f32 %v2222_v28  ;;  %v1326_v2 = vadd.f32 %v1325_v49, %v1312_v61 }
 0x237   :  { %v1455_v0 = vsel %vm2839_vm9, %v1454_v43, %v1450_v62  ;;  %2437 = vrcp.f32 %v2857_v1  ;;  %v2861_v5 = vadd.f32 1.0, %v2430_v3  ;;  %v1571_v17 = vand.u32 2147483647, %v2857_v1 }
 0x238   :  { %1624 = vst [vmem:[#allocation11 + $0x10] sm:$0xff] %v1455_v0  ;;  %v1461_v57 = vadd.f32 %v2424_v40, %v1460_v63  ;;  %v2223_v9 = vmul.f32 -1.442695, %v1326_v2  ;;  %v1573_v22 = vand.u32 2147483648, %v2857_v1  ;;  %vm2874_vm2 = vcmp.eq.f32.partialorder %v1556_v12, 8.507059e+37 }
 0x239   :  { %v2432_v6 = vpop.eup %2431  ;;  %2439 = vrcp.f32 %v2861_v5  ;;  %v1559_v26 = vor.u32 1.1754944e-38, %v1558_v13  ;;  %vm1567_vm3 = vweird.f32 %v2857_v1  ;;  %vm2879_vm4 = vcmp.eq.f32.partialorder %v1571_v17, 8.507059e+37 }
 0x23a   :  { %v1465_v4 = vsel %vm1464_vm14, %v2424_v40, %v1461_v57  ;;  %v2864_v14 = vadd.f32 1.0, %v2432_v6  ;;  %2441 = vpow2.f32 %v2223_v9  ;;  %v1481_v35 = vand.u32 2147483647, %v2861_v5 }
 0x23b   :  { %v1470_v8 = vsel %vm1467_vm15, %v1469_v32, %v1465_v4  ;;  %v2434_v10 = vpop.eup %2433  ;;  %v1483_v36 = vand.u32 2147483648, %v2861_v5  ;;  %v1574_v40 = vor.u32 1.1754944e-38, %v1573_v22  ;;  %vm1477_vm7 = vweird.f32 %v2861_v5 }
 0x23c   :  { %1625 = vst [vmem:[#allocation11 + $0x18] sm:$0xff] %v1470_v8  ;;  %v1548_v11 = vmul.f32 %v2434_v10, %v1407_v33  ;;  %v2436_v7 = vpop.eup %2435  ;;  %2443 = vrcp.f32 %v2864_v14  ;;  %vm1553_vm0 = vweird.f32 %v2434_v10  ;;  %vm2898_vm10 = vcmp.eq.f32.partialorder %v1481_v35, 8.507059e+37 }
 0x23d   :  { %v2438_v15 = vpop.eup %2437  ;;  %v2867_v18 = vadd.f32 1.0, %v2436_v7  ;;  %vm1554_vm5 = vmor %vm1552_vm1, %vm1553_vm0  ;;  %v1484_v54 = vor.u32 1.1754944e-38, %v1483_v36  ;;  %v1496_v59 = vand.u32 2147483647, %v2864_v14  ;;  %v1498_v60 = vand.u32 2147483648, %v2864_v14 }
 0x23e   :  { %v1549_v16 = vsub.f32 1.0, %v1548_v11  ;;  %v1563_v19 = vmul.f32 %v2438_v15, %v2857_v1  ;;  %vm1568_vm6 = vweird.f32 %v2438_v15  ;;  %vm1492_vm14 = vweird.f32 %v2864_v14 }
 0x23f   :  { %2445 = vrcp.f32 %v2867_v18  ;;  %v2440_v24 = vpop.eup %2439  ;;  %vm1569_vm8 = vmor %vm1567_vm3, %vm1568_vm6  ;;  %v1586_v28 = vand.u32 2147483647, %v2867_v18  ;;  %v1588_v0 = vand.u32 2147483648, %v2867_v18  ;;  %vm1582_vm15 = vweird.f32 %v2867_v18 }
 0x240   :  { %v1550_v21 = vmul.f32 %v2434_v10, %v1549_v16  ;;  %v1564_v27 = vsub.f32 1.0, %v1563_v19  ;;  %v1473_v31 = vmul.f32 %v2440_v24, %v2861_v5  ;;  %v2442_v34 = vpop.eup %2441  ;;  %vm1478_vm9 = vweird.f32 %v2440_v24 }
 0x241   :  { %v2886_v43 = vadd.f32 1.0, %v2442_v34  ;;  %vm1479_vm11 = vmor %vm1477_vm7, %vm1478_vm9  ;;  %v1499_v6 = vor.u32 1.1754944e-38, %v1498_v60  ;;  %vm1497_vm1 = vcmp.eq.f32.partialorder %v1496_v59, 8.507059e+37  ;;  %v1589_v7 = vor.u32 1.1754944e-38, %v1588_v0 }
 0x242   :  { %v1551_v29 = vadd.f32 %v2434_v10, %v1550_v21  ;;  %v1565_v23 = vmul.f32 %v2438_v15, %v1564_v27  ;;  %v1474_v42 = vsub.f32 1.0, %v1473_v31  ;;  %v2444_v44 = vpop.eup %2443  ;;  %vm1587_vm3 = vcmp.eq.f32.partialorder %v1586_v28, 8.507059e+37 }
 0x243   :  { %v1488_v52 = vmul.f32 %v2444_v44, %v2864_v14  ;;  %2447 = vrcp.f32 %v2886_v43  ;;  %vm1493_vm12 = vweird.f32 %v2444_v44  ;;  %v1603_v16 = vand.u32 2147483648, %v2886_v43 }
 0x244   :  { %v1555_v39 = vsel %vm1554_vm5, %v2434_v10, %v1551_v29  ;;  %v1566_v46 = vadd.f32 %v2438_v15, %v1565_v23  ;;  %v1475_v50 = vmul.f32 %v2440_v24, %v1474_v42  ;;  %vm1494_vm0 = vmor %vm1492_vm14, %vm1493_vm12  ;;  %v1601_v19 = vand.u32 2147483647, %v2886_v43 }
 0x245   :  { %v1560_v45 = vsel %vm2874_vm2, %v1559_v26, %v1555_v39  ;;  %v2446_v48 = vpop.eup %2445  ;;  %v1489_v33 = vsub.f32 1.0, %v1488_v52  ;;  %vm1597_vm5 = vweird.f32 %v2886_v43  ;;  %v1604_v22 = vor.u32 1.1754944e-38, %v1603_v16 }
 0x246   :  { %1631 = vst [vmem:[#allocation11 + $0x48] sm:$0xff] %v1560_v45  ;;  %v1570_v41 = vsel %vm1569_vm8, %v2438_v15, %v1566_v46  ;;  %v1578_v55 = vmul.f32 %v2446_v48, %v2867_v18  ;;  %v1476_v58 = vadd.f32 %v2440_v24, %v1475_v50  ;;  %vm1583_vm13 = vweird.f32 %v2446_v48 }
 0x247   :  { %v1337_v37 = vpop.f32.mrf.mxu3  ;;  %v1351_v38 = vpop.f32.mrf.mxu0  ;;  %v1575_v56 = vsel %vm2879_vm4, %v1574_v40, %v1570_v41  ;;  %v1490_v49 = vmul.f32 %v2444_v44, %v1489_v33  ;;  %vm1584_vm2 = vmor %vm1582_vm15, %vm1583_vm13  ;;  %vm1602_vm7 = vcmp.eq.f32.partialorder %v1601_v19, 8.507059e+37 }
 0x248   :  { %v1338_v47 = vadd.f32 %v1337_v37, %v576_v20  ;;  %1632 = vst [vmem:[#allocation11 + $0x50] sm:$0xff] %v1575_v56  ;;  %v1579_v61 = vsub.f32 1.0, %v1578_v55  ;;  %v1480_v63 = vsel %vm1479_vm11, %v2440_v24, %v1476_v58 }
 0x249   :  { %v1485_v1 = vsel %vm2898_vm10, %v1484_v54, %v1480_v63  ;;  %v2448_v32 = vpop.eup %2447  ;;  %v1491_v4 = vadd.f32 %v2444_v44, %v1490_v49 }
 0x24a   :  { %v1352_v62 = vadd.f32 %v1351_v38, %v1338_v47  ;;  %v1580_v57 = vmul.f32 %v2446_v48, %v1579_v61  ;;  %1626 = vst [vmem:[#allocation11 + $0x20] sm:$0xff] %v1485_v1  ;;  %v1593_v9 = vmul.f32 %v2448_v32, %v2886_v43  ;;  %vm1598_vm4 = vweird.f32 %v2448_v32 }
 0x24b   :  { %v1495_v11 = vsel %vm1494_vm0, %v2444_v44, %v1491_v4  ;;  %vm1599_vm6 = vmor %vm1597_vm5, %vm1598_vm4 }
 0x24c   :  { %v2217_v2 = vmul.f32 -1.442695, %v1352_v62  ;;  %v1581_v8 = vadd.f32 %v2446_v48, %v1580_v57  ;;  %v1500_v13 = vsel %vm1497_vm1, %v1499_v6, %v1495_v11  ;;  %v1594_v15 = vsub.f32 1.0, %v1593_v9 }
 0x24d   :  { %1627 = vst [vmem:[#allocation11 + $0x28] sm:$0xff] %v1500_v13 }
 0x24e   :  { %2449 = vpow2.f32 %v2217_v2  ;;  %v1585_v14 = vsel %vm1584_vm2, %v2446_v48, %v1581_v8  ;;  %v1595_v18 = vmul.f32 %v2448_v32, %v1594_v15 }
 0x24f   :  { %v1339_v3 = vpop.f32.mrf.mxu3  ;;  %v1353_v10 = vpop.f32.mrf.mxu0  ;;  %v1590_v51 = vsel %vm1587_vm3, %v1589_v7, %v1585_v14 }
 0x250   :  { %v1340_v5 = vadd.f32 %v1339_v3, %v576_v20  ;;  %1633 = vst [vmem:[#allocation11 + $0x58] sm:$0xff] %v1590_v51  ;;  %v1596_v21 = vadd.f32 %v2448_v32, %v1595_v18 }
 0x252   :  { %v1354_v12 = vadd.f32 %v1353_v10, %v1340_v5  ;;  %v1600_v25 = vsel %vm1599_vm6, %v2448_v32, %v1596_v21 }
 0x253   :  { %v1605_v26 = vsel %vm1602_vm7, %v1604_v22, %v1600_v25 }
 0x254   :  { %v2224_v17 = vmul.f32 -1.442695, %v1354_v12  ;;  %v2450_v20 = vpop.eup %2449  ;;  %1634 = vst [vmem:[#allocation11 + $0x60] sm:$0xff] %v1605_v26 }
 0x255   :  { %v1404_v24 = vadd.f32 1.0, %v2450_v20 }
 0x256   :  { %2451 = vpow2.f32 %v2224_v17 }
 0x257   :  { %2453 = vrcp.f32 %v1404_v24  ;;  %v1513_v23 = vand.u32 2147483648, %v1404_v24  ;;  %v1511_v37 = vand.u32 2147483647, %v1404_v24  ;;  %vm1507_vm9 = vweird.f32 %v1404_v24 }
 0x259   :  { %v1514_v40 = vor.u32 1.1754944e-38, %v1513_v23  ;;  %vm1512_vm11 = vcmp.eq.f32.partialorder %v1511_v37, 8.507059e+37 }
 0x25c   :  { %v2452_v27 = vpop.eup %2451 }
 0x25d   :  { %v1411_v29 = vadd.f32 1.0, %v2452_v27  ;;  %v2454_v30 = vpop.eup %2453 }
 0x25e   :  { %v1503_v31 = vmul.f32 %v2454_v30, %v1404_v24  ;;  %vm1508_vm8 = vweird.f32 %v2454_v30 }
 0x25f   :  { %2455 = vrcp.f32 %v1411_v29  ;;  %vm1509_vm10 = vmor %vm1507_vm9, %vm1508_vm8  ;;  %v1618_v44 = vand.u32 2147483648, %v1411_v29  ;;  %v1616_v47 = vand.u32 2147483647, %v1411_v29  ;;  %vm1612_vm13 = vweird.f32 %v1411_v29 }
 0x260   :  { %v1504_v34 = vsub.f32 1.0, %v1503_v31 }
 0x261   :  { %v1619_v50 = vor.u32 1.1754944e-38, %v1618_v44  ;;  %vm1617_vm15 = vcmp.eq.f32.partialorder %v1616_v47, 8.507059e+37 }
 0x262   :  { %v1505_v36 = vmul.f32 %v2454_v30, %v1504_v34 }
 0x264   :  { %v1506_v39 = vadd.f32 %v2454_v30, %v1505_v36 }
 0x265   :  { %v2456_v35 = vpop.eup %2455 }
 0x266   :  { %v1608_v38 = vmul.f32 %v2456_v35, %v1411_v29  ;;  %v1510_v43 = vsel %vm1509_vm10, %v2454_v30, %v1506_v39  ;;  %vm1613_vm12 = vweird.f32 %v2456_v35 }
 0x267   :  { %v1515_v45 = vsel %vm1512_vm11, %v1514_v40, %v1510_v43  ;;  %vm1614_vm14 = vmor %vm1612_vm13, %vm1613_vm12 }
 0x268   :  { %v1609_v42 = vsub.f32 1.0, %v1608_v38  ;;  %1628 = vst [vmem:[#allocation11 + $0x30] sm:$0xff] %v1515_v45 }
 0x26a   :  { %v1610_v46 = vmul.f32 %v2456_v35, %v1609_v42 }
 0x26c   :  { %v1611_v48 = vadd.f32 %v2456_v35, %v1610_v46 }
 0x26e   :  { %v1615_v52 = vsel %vm1614_vm14, %v2456_v35, %v1611_v48 }
 0x26f   :  { %v1620_v41 = vsel %vm1617_vm15, %v1619_v50, %v1615_v52 }
 0x270   :  { %1635 = vst [vmem:[#allocation11 + $0x68] sm:$0xff] %v1620_v41 }
 0x271   :  { %1648 = dma.vmem_to_hbm [thread:$0]  %s1641_s30, 1792, %s1643_s10, [#allocation4], %s2621_s11, %s2621_s11, %s2622_s12  }
 0x272   :  { %2607 = dma.done.wait [#allocation4], 1792  }
 0x273   :  { %2608 = vsyncadd [#allocation4], 4294965504 }
 0x274   :  { %1653 = vsyncpa [#allocation3], 1 }
 0x275   :  { %1654 = vsyncpa [#allocation6], 1 }
 0x276   :  { %1655 = vsyncpa [#allocation9], 1 }
 0x277   :  { %1656 = vsyncpa [#allocation4], 1 }

</bundles_post_ra>
